<compile_context>
chip_gen: v7x
topology: tpu7x:2x2x1
jax: 0.10.0
libtpu: 0.0.40
codegen_flags: <defaults>
</compile_context>

<pallas_src>
import jax
import jax.numpy as jnp
import numpy as np
from jax import lax
from jax.experimental import pallas as pl
from jax.experimental.pallas import tpu as pltpu

_MAX_TILE_B = 128  # multiple of 8; sweepable 64..256


def _pick_tile_b(B):
    """Largest multiple of 8 <= _MAX_TILE_B that still yields >= 2 grid steps
    (keeps both v7x TensorCores busy under dimension_semantics=('parallel',))."""
    if B <= 8:
        return 8
    return max(8, min(_MAX_TILE_B, (B // 2) // 8 * 8))


# ----------------------------- Pallas kernel -------------------------------

def _net_kernel(x_ref,
                band1_ref, bias1_ref, sel1_ref,
                band2_ref, bias2_ref, sel2_ref,
                wf1_ref, bf1_ref, wf2_ref, bf2_ref,
                o_ref):
    f32, bf16 = jnp.float32, jnp.bfloat16
    TB = x_ref.shape[1]  # x_ref block is (28, TB, 28): rows ordered (height, batch)

    # ---- conv1 (5x5, 1->5, valid): 5 accumulated banded MXU matmuls + bias + relu
    # rows: (out_h, b) ; lanes: out_w*5 + out_ch  (24*5 = 120)
    y1 = jnp.zeros((24 * TB, 120), f32)
    for di in range(5):
        xs = x_ref[di:di + 24].reshape(24 * TB, 28).astype(bf16)  # bf16 MXU operand
        y1 = y1 + jnp.dot(xs, band1_ref[di], preferred_element_type=f32)
    y1 = jnp.maximum(y1 + bias1_ref[...], 0.0)                    # f32 elementwise

    # ---- maxpool1 2x2: ONE fused even|odd selector matmul (120->120), max of the
    # two 60-lane halves (W pairs), then vreg-aligned row pairing (H pairs).
    z1 = jnp.dot(y1.astype(bf16), sel1_ref[...], preferred_element_type=f32)
    wp1 = jnp.maximum(z1[:, :60], z1[:, 60:]).reshape(12, 2, TB, 60)
    pooled1 = jnp.maximum(wp1[:, 0], wp1[:, 1])                   # (12, TB, 60)

    # ---- conv2 (5x5, 5->10, valid): 5 accumulated banded matmuls + bias + relu
    # rows: (out_h, b) ; lanes: out_w*10 + out_ch  (8*10 = 80)
    y2 = jnp.zeros((8 * TB, 80), f32)
    for di in range(5):
        sl = pooled1[di:di + 8].reshape(8 * TB, 60).astype(bf16)
        y2 = y2 + jnp.dot(sl, band2_ref[di], preferred_element_type=f32)
    y2 = jnp.maximum(y2 + bias2_ref[...], 0.0)

    # ---- maxpool2 (fused selector) + flatten + fc1 (+relu)
    z2 = jnp.dot(y2.astype(bf16), sel2_ref[...], preferred_element_type=f32)
    wp2 = jnp.maximum(z2[:, :40], z2[:, 40:]).reshape(4, 2, TB, 40)
    hp2 = jnp.maximum(wp2[:, 0], wp2[:, 1])                       # (4, TB, 40)

    acc = jnp.zeros((TB, 100), f32)
    for i in range(4):                  # flatten folded into fc1 row-blocks
        acc = acc + jnp.dot(hp2[i].astype(bf16), wf1_ref[i],
                            preferred_element_type=f32)
    h = jnp.maximum(acc + bf1_ref[...], 0.0)                      # (TB, 100)

    # ---- fc2 + log-softmax (f32 elementwise / EUP)
    logits = jnp.dot(h.astype(bf16), wf2_ref[...],
                     preferred_element_type=f32) + bf2_ref[...]
    m = jnp.max(logits, axis=-1, keepdims=True)
    lse = jnp.log(jnp.sum(jnp.exp(logits - m), axis=-1, keepdims=True))
    o_ref[...] = logits - m - lse


# ------------------------------ JAX wrappers ---------------------------------

@jax.jit
def net_forward_hbw(x_hbw, kp):
    """Fused forward pass.  x_hbw is the kernel-native layout (28, B, 28) =
    (h, b, w); produce inputs directly in this layout to avoid an extra per-call
    HBM relayout (perf-review item)."""
    H, B, W = x_hbw.shape
    assert (H, W) == (28, 28)
    tb = _pick_tile_b(B)
    pad = (-B) % tb
    if pad:
        x_hbw = jnp.pad(x_hbw, ((0, 0), (0, pad), (0, 0)))
    Bp = B + pad

    def full(*s):
        return pl.BlockSpec(s, lambda i, n=len(s): (0,) * n)   # resident weights

    out = pl.pallas_call(
        _net_kernel,
        out_shape=jax.ShapeDtypeStruct((Bp, 10), jnp.float32),
        grid=(Bp // tb,),
        in_specs=[
            pl.BlockSpec((28, tb, 28), lambda i: (0, i, 0)),    # input batch tile
            full(5, 28, 120), full(1, 120), full(120, 120),
            full(5, 60, 80),  full(1, 80),  full(80, 80),
            full(4, 40, 100), full(1, 100), full(100, 10), full(1, 10),
        ],
        out_specs=pl.BlockSpec((tb, 10), lambda i: (i, 0)),
        compiler_params=pltpu.CompilerParams(
            dimension_semantics=("parallel",)),
        # NOTE: set vmem_limit_bytes here only if _MAX_TILE_B is raised to >=512.
    )(x_hbw, kp["band1"], kp["bias1"], kp["sel1"],
      kp["band2"], kp["bias2"], kp["sel2"],
      kp["wf1"], kp["bf1"], kp["wf2"], kp["bf2"])
    return out[:B] if pad else out      # no extra HBM copy when B % tb == 0


@jax.jit
def net_forward(x_nchw, kp):
    """NCHW adapter (nn.Module parity).  Costs one HBM relayout; prefer producing
    (28, B, 28) inputs and calling net_forward_hbw directly."""
    B = x_nchw.shape[0]
    assert x_nchw.shape[1:] == (1, 28, 28)
    x_hbw = jnp.transpose(x_nchw.reshape(B, 28, 28), (1, 0, 2))
    return net_forward_hbw(x_hbw, kp)


# -------------------- one-time weight layout preparation --------------------

def prepare_kernel_params(p):
    """PyTorch-layout weights -> kernel layout: banded conv matrices, fused
    even|odd pool selectors, fc1 row permutation (absorbs PyTorch's (C,H,W)
    flatten).  MXU operands stored in bf16; biases stay f32.  Runs once on host."""
    w1 = np.asarray(p["conv1_w"], np.float32)   # (5, 1, 5, 5)
    b1 = np.asarray(p["conv1_b"], np.float32)
    w2 = np.asarray(p["conv2_w"], np.float32)   # (10, 5, 5, 5)
    b2 = np.asarray(p["conv2_b"], np.float32)
    wf1 = np.asarray(p["fc1_w"], np.float32)    # (100, 160)
    bf1 = np.asarray(p["fc1_b"], np.float32)
    wf2 = np.asarray(p["fc2_w"], np.float32)    # (10, 100)
    bf2 = np.asarray(p["fc2_b"], np.float32)

    # conv1: band1[di, w_in, j*5+oc] = w1[oc, 0, di, w_in - j]
    band1 = np.zeros((5, 28, 24 * 5), np.float32)
    for di in range(5):
        for j in range(24):
            for dj in range(5):
                band1[di, j + dj, j * 5:j * 5 + 5] = w1[:, 0, di, dj]

    # conv2: band2[di, j_in*5+ic, j*10+oc] = w2[oc, ic, di, j_in - j]
    band2 = np.zeros((5, 12 * 5, 8 * 10), np.float32)
    for di in range(5):
        for j in range(8):
            for dj in range(5):
                for ic in range(5):
                    band2[di, (j + dj) * 5 + ic, j * 10:j * 10 + 10] = w2[:, ic, di, dj]

    def pool_sel(n_j, c, parity):  # 0/1 lane selector for 2x2 max-pool along W
        s = np.zeros((n_j * c, (n_j // 2) * c), np.float32)
        for jp in range(n_j // 2):
            for ch in range(c):
                s[(2 * jp + parity) * c + ch, jp * c + ch] = 1.0
        return s

    # fused even|odd selectors: one matmul per pool stage, halves lane-0..-1
    sel1 = np.concatenate([pool_sel(24, 5, 0), pool_sel(24, 5, 1)], axis=1)  # (120,120)
    sel2 = np.concatenate([pool_sel(8, 10, 0), pool_sel(8, 10, 1)], axis=1)  # (80,80)

    # fc1: permute rows so our (h, w, c) flatten matches PyTorch's (c, h, w) view,
    # split into 4 h-blocks so the kernel indexes whole leading slabs.
    wf1_r = np.zeros((160, 100), np.float32)
    for hh in range(4):
        for ww in range(4):
            for cc in range(10):
                wf1_r[hh * 40 + ww * 10 + cc, :] = wf1[:, cc * 16 + hh * 4 + ww]
    wf1_r = wf1_r.reshape(4, 40, 100)

    as_bf16 = lambda a: jnp.asarray(a, jnp.bfloat16)   # MXU operands
    as_f32 = lambda a: jnp.asarray(a, jnp.float32)     # biases (f32 VPU adds)
    return {
        "band1": as_bf16(band1), "bias1": as_f32(np.tile(b1, 24)[None, :]),
        "sel1": as_bf16(sel1),
        "band2": as_bf16(band2), "bias2": as_f32(np.tile(b2, 8)[None, :]),
        "sel2": as_bf16(sel2),
        "wf1": as_bf16(wf1_r), "bf1": as_f32(bf1[None, :]),
        "wf2": as_bf16(wf2.T), "bf2": as_f32(bf2[None, :]),
    }


# ------------------------- pure-JAX reference path --------------------------

def net_forward_ref(x_nchw, p):
    HI = lax.Precision.HIGHEST

    def conv2d(x, w, b):  # valid 5x5, stride 1; PyTorch cross-correlation
        B, Ci, H, W = x.shape
        Co = w.shape[0]
        Ho, Wo = H - 4, W - 4
        cols = []
        for ic in range(Ci):
            for di in range(5):
                for dj in range(5):
                    cols.append(x[:, ic, di:di + Ho, dj:dj + Wo])
        patches = jnp.stack(cols, axis=-1)                       # (B,Ho,Wo,Ci*25)
        y = jnp.dot(patches, w.reshape(Co, Ci * 25).T, precision=HI) + b
        return jnp.transpose(y, (0, 3, 1, 2))

    def pool(x):
        B, C, H, W = x.shape
        return jnp.max(x.reshape(B, C, H // 2, 2, W // 2, 2), axis=(3, 5))

    y = pool(jnp.maximum(conv2d(x_nchw, p["conv1_w"], p["conv1_b"]), 0.0))
    y = pool(jnp.maximum(conv2d(y, p["conv2_w"], p["conv2_b"]), 0.0))
    flat = y.reshape(y.shape[0], 160)                            # (C,H,W) order
    h = jnp.maximum(jnp.dot(flat, p["fc1_w"].T, precision=HI) + p["fc1_b"], 0.0)
    logits = jnp.dot(h, p["fc2_w"].T, precision=HI) + p["fc2_b"]
    return jax.nn.log_softmax(logits, axis=-1)


def init_params(key):
    """Deterministic synthetic weights in PyTorch layout (uniform fan-in init)."""
    ks = jax.random.split(key, 8)

    def u(k, shape, fan_in):
        b = 1.0 / np.sqrt(fan_in)
        return jax.random.uniform(k, shape, jnp.float32, -b, b)

    return {
        "conv1_w": u(ks[0], (5, 1, 5, 5), 25), "conv1_b": u(ks[1], (5,), 25),
        "conv2_w": u(ks[2], (10, 5, 5, 5), 125), "conv2_b": u(ks[3], (10,), 125),
        "fc1_w": u(ks[4], (100, 160), 160), "fc1_b": u(ks[5], (100,), 160),
        "fc2_w": u(ks[6], (10, 100), 100), "fc2_b": u(ks[7], (10,), 100),
    }


if __name__ == "__main__":
    key = jax.random.PRNGKey(0)
    kx, kw = jax.random.split(key)
    B = 16
    x_nchw = jax.random.normal(kx, (B, 1, 28, 28), jnp.float32)
    params = init_params(kw)

    # Round inputs/weights to the bf16 grid so the bf16-MXU kernel and the f32
    # reference see identical weights; the only remaining delta is bf16 rounding
    # of intermediate activations (covered by the tolerance).
    to_bf16_grid = lambda a: a.astype(jnp.bfloat16).astype(jnp.float32)
    x_nchw = to_bf16_grid(x_nchw)
    params = {k: to_bf16_grid(v) for k, v in params.items()}

    kparams = prepare_kernel_params(params)

    # Kernel-native input layout (28, B, 28); in a real pipeline the data producer
    # emits this layout directly (removes the per-call HBM transpose from review).
    x_hbw = jnp.transpose(x_nchw.reshape(B, 28, 28), (1, 0, 2))

    out = net_forward_hbw(x_hbw, kparams)
    jax.block_until_ready(out)

    ref = net_forward_ref(x_nchw, params)
    assert out.shape == (B, 10), out.shape
    err = float(jnp.max(jnp.abs(out - ref)))
    # Tolerance covers bf16 rounding of intermediates fed to the MXU.
    assert err < 5e-2, f"mismatch vs reference: {err}"

    print("KERNEL_OK")
</pallas_src>

<mosaic_0001>
module attributes {stable_mosaic.version = 11 : i64} {
  func.func @_net_kernel(%arg0: i32, %arg1: memref<28x8x28xf32, #tpu.memory_space<vmem>>, %arg2: memref<5x28x120xbf16, #tpu.memory_space<vmem>>, %arg3: memref<1x120xf32, #tpu.memory_space<vmem>>, %arg4: memref<120x120xbf16, #tpu.memory_space<vmem>>, %arg5: memref<5x60x80xbf16, #tpu.memory_space<vmem>>, %arg6: memref<1x80xf32, #tpu.memory_space<vmem>>, %arg7: memref<80x80xbf16, #tpu.memory_space<vmem>>, %arg8: memref<4x40x100xbf16, #tpu.memory_space<vmem>>, %arg9: memref<1x100xf32, #tpu.memory_space<vmem>>, %arg10: memref<100x10xbf16, #tpu.memory_space<vmem>>, %arg11: memref<1x10xf32, #tpu.memory_space<vmem>>, %arg12: memref<8x10xf32, #tpu.memory_space<vmem>>) attributes {dimension_semantics = [#tpu.dimension_semantics<parallel>], iteration_bounds = array<i64: 2>, scalar_prefetch = 0 : i64, scratch_operands = 0 : i64, tpu.core_type = #tpu.core_type<tc>, window_params = [{transform_indices = @transform_0, window_bounds = array<i64: 28, 8, 28>}, {pipeline_mode = #tpu.pipeline_mode<synchronous>, transform_indices = @transform_1, window_bounds = array<i64: 5, 28, 120>}, {pipeline_mode = #tpu.pipeline_mode<synchronous>, transform_indices = @transform_2, window_bounds = array<i64: 1, 120>}, {pipeline_mode = #tpu.pipeline_mode<synchronous>, transform_indices = @transform_3, window_bounds = array<i64: 120, 120>}, {pipeline_mode = #tpu.pipeline_mode<synchronous>, transform_indices = @transform_4, window_bounds = array<i64: 5, 60, 80>}, {pipeline_mode = #tpu.pipeline_mode<synchronous>, transform_indices = @transform_5, window_bounds = array<i64: 1, 80>}, {pipeline_mode = #tpu.pipeline_mode<synchronous>, transform_indices = @transform_6, window_bounds = array<i64: 80, 80>}, {pipeline_mode = #tpu.pipeline_mode<synchronous>, transform_indices = @transform_7, window_bounds = array<i64: 4, 40, 100>}, {pipeline_mode = #tpu.pipeline_mode<synchronous>, transform_indices = @transform_8, window_bounds = array<i64: 1, 100>}, {pipeline_mode = #tpu.pipeline_mode<synchronous>, transform_indices = @transform_9, window_bounds = array<i64: 100, 10>}, {pipeline_mode = #tpu.pipeline_mode<synchronous>, transform_indices = @transform_10, window_bounds = array<i64: 1, 10>}, {transform_indices = @transform_11, window_bounds = array<i64: 8, 10>}]} {
    %cst = arith.constant 0.000000e+00 : f32
    %0 = vector.broadcast %cst : f32 to vector<192x120xf32>
    %c0 = arith.constant 0 : index
    %c0_0 = arith.constant 0 : index
    %c0_1 = arith.constant 0 : index
    %1 = vector.load %arg1[%c0, %c0_0, %c0_1] : memref<28x8x28xf32, #tpu.memory_space<vmem>>, vector<24x8x28xf32>
    %2 = vector.shape_cast %1 : vector<24x8x28xf32> to vector<192x28xf32>
    %3 = arith.truncf %2 : vector<192x28xf32> to vector<192x28xbf16>
    %c0_2 = arith.constant 0 : index
    %c0_3 = arith.constant 0 : index
    %c0_4 = arith.constant 0 : index
    %4 = vector.load %arg2[%c0_2, %c0_3, %c0_4] : memref<5x28x120xbf16, #tpu.memory_space<vmem>>, vector<1x28x120xbf16>
    %5 = vector.shape_cast %4 : vector<1x28x120xbf16> to vector<28x120xbf16>
    %cst_5 = arith.constant dense<0.000000e+00> : vector<192x120xf32>
    %6 = tpu.matmul %3, %5, %cst_5 {dimension_numbers = #tpu.dot_dimension_numbers<[1], [0], [0], [1], [0, 0, 1, 1], [], []>} : vector<192x28xbf16>, vector<28x120xbf16>, vector<192x120xf32> -> vector<192x120xf32>
    %7 = arith.addf %0, %6 : vector<192x120xf32>
    %c1 = arith.constant 1 : index
    %c0_6 = arith.constant 0 : index
    %c0_7 = arith.constant 0 : index
    %8 = vector.load %arg1[%c1, %c0_6, %c0_7] : memref<28x8x28xf32, #tpu.memory_space<vmem>>, vector<24x8x28xf32>
    %9 = vector.shape_cast %8 : vector<24x8x28xf32> to vector<192x28xf32>
    %10 = arith.truncf %9 : vector<192x28xf32> to vector<192x28xbf16>
    %c1_8 = arith.constant 1 : index
    %c0_9 = arith.constant 0 : index
    %c0_10 = arith.constant 0 : index
    %11 = vector.load %arg2[%c1_8, %c0_9, %c0_10] : memref<5x28x120xbf16, #tpu.memory_space<vmem>>, vector<1x28x120xbf16>
    %12 = vector.shape_cast %11 : vector<1x28x120xbf16> to vector<28x120xbf16>
    %cst_11 = arith.constant dense<0.000000e+00> : vector<192x120xf32>
    %13 = tpu.matmul %10, %12, %cst_11 {dimension_numbers = #tpu.dot_dimension_numbers<[1], [0], [0], [1], [0, 0, 1, 1], [], []>} : vector<192x28xbf16>, vector<28x120xbf16>, vector<192x120xf32> -> vector<192x120xf32>
    %14 = arith.addf %7, %13 : vector<192x120xf32>
    %c2 = arith.constant 2 : index
    %c0_12 = arith.constant 0 : index
    %c0_13 = arith.constant 0 : index
    %15 = vector.load %arg1[%c2, %c0_12, %c0_13] : memref<28x8x28xf32, #tpu.memory_space<vmem>>, vector<24x8x28xf32>
    %16 = vector.shape_cast %15 : vector<24x8x28xf32> to vector<192x28xf32>
    %17 = arith.truncf %16 : vector<192x28xf32> to vector<192x28xbf16>
    %c2_14 = arith.constant 2 : index
    %c0_15 = arith.constant 0 : index
    %c0_16 = arith.constant 0 : index
    %18 = vector.load %arg2[%c2_14, %c0_15, %c0_16] : memref<5x28x120xbf16, #tpu.memory_space<vmem>>, vector<1x28x120xbf16>
    %19 = vector.shape_cast %18 : vector<1x28x120xbf16> to vector<28x120xbf16>
    %cst_17 = arith.constant dense<0.000000e+00> : vector<192x120xf32>
    %20 = tpu.matmul %17, %19, %cst_17 {dimension_numbers = #tpu.dot_dimension_numbers<[1], [0], [0], [1], [0, 0, 1, 1], [], []>} : vector<192x28xbf16>, vector<28x120xbf16>, vector<192x120xf32> -> vector<192x120xf32>
    %21 = arith.addf %14, %20 : vector<192x120xf32>
    %c3 = arith.constant 3 : index
    %c0_18 = arith.constant 0 : index
    %c0_19 = arith.constant 0 : index
    %22 = vector.load %arg1[%c3, %c0_18, %c0_19] : memref<28x8x28xf32, #tpu.memory_space<vmem>>, vector<24x8x28xf32>
    %23 = vector.shape_cast %22 : vector<24x8x28xf32> to vector<192x28xf32>
    %24 = arith.truncf %23 : vector<192x28xf32> to vector<192x28xbf16>
    %c3_20 = arith.constant 3 : index
    %c0_21 = arith.constant 0 : index
    %c0_22 = arith.constant 0 : index
    %25 = vector.load %arg2[%c3_20, %c0_21, %c0_22] : memref<5x28x120xbf16, #tpu.memory_space<vmem>>, vector<1x28x120xbf16>
    %26 = vector.shape_cast %25 : vector<1x28x120xbf16> to vector<28x120xbf16>
    %cst_23 = arith.constant dense<0.000000e+00> : vector<192x120xf32>
    %27 = tpu.matmul %24, %26, %cst_23 {dimension_numbers = #tpu.dot_dimension_numbers<[1], [0], [0], [1], [0, 0, 1, 1], [], []>} : vector<192x28xbf16>, vector<28x120xbf16>, vector<192x120xf32> -> vector<192x120xf32>
    %28 = arith.addf %21, %27 : vector<192x120xf32>
    %c4 = arith.constant 4 : index
    %c0_24 = arith.constant 0 : index
    %c0_25 = arith.constant 0 : index
    %29 = vector.load %arg1[%c4, %c0_24, %c0_25] : memref<28x8x28xf32, #tpu.memory_space<vmem>>, vector<24x8x28xf32>
    %30 = vector.shape_cast %29 : vector<24x8x28xf32> to vector<192x28xf32>
    %31 = arith.truncf %30 : vector<192x28xf32> to vector<192x28xbf16>
    %c4_26 = arith.constant 4 : index
    %c0_27 = arith.constant 0 : index
    %c0_28 = arith.constant 0 : index
    %32 = vector.load %arg2[%c4_26, %c0_27, %c0_28] : memref<5x28x120xbf16, #tpu.memory_space<vmem>>, vector<1x28x120xbf16>
    %33 = vector.shape_cast %32 : vector<1x28x120xbf16> to vector<28x120xbf16>
    %cst_29 = arith.constant dense<0.000000e+00> : vector<192x120xf32>
    %34 = tpu.matmul %31, %33, %cst_29 {dimension_numbers = #tpu.dot_dimension_numbers<[1], [0], [0], [1], [0, 0, 1, 1], [], []>} : vector<192x28xbf16>, vector<28x120xbf16>, vector<192x120xf32> -> vector<192x120xf32>
    %35 = arith.addf %28, %34 : vector<192x120xf32>
    %c0_30 = arith.constant 0 : index
    %c0_31 = arith.constant 0 : index
    %36 = vector.load %arg3[%c0_30, %c0_31] : memref<1x120xf32, #tpu.memory_space<vmem>>, vector<1x120xf32>
    %37 = vector.broadcast %36 : vector<1x120xf32> to vector<192x120xf32>
    %38 = arith.addf %35, %37 : vector<192x120xf32>
    %cst_32 = arith.constant 0.000000e+00 : f32
    %39 = vector.broadcast %cst_32 : f32 to vector<192x120xf32>
    %40 = arith.maximumf %38, %39 : vector<192x120xf32>
    %41 = arith.truncf %40 : vector<192x120xf32> to vector<192x120xbf16>
    %c0_33 = arith.constant 0 : index
    %c0_34 = arith.constant 0 : index
    %42 = vector.load %arg4[%c0_33, %c0_34] : memref<120x120xbf16, #tpu.memory_space<vmem>>, vector<120x120xbf16>
    %cst_35 = arith.constant dense<0.000000e+00> : vector<192x120xf32>
    %43 = tpu.matmul %41, %42, %cst_35 {dimension_numbers = #tpu.dot_dimension_numbers<[1], [0], [0], [1], [0, 0, 1, 1], [], []>} : vector<192x120xbf16>, vector<120x120xbf16>, vector<192x120xf32> -> vector<192x120xf32>
    %44 = vector.extract_strided_slice %43 {offsets = [0, 0], sizes = [192, 60], strides = [1, 1]} : vector<192x120xf32> to vector<192x60xf32>
    %45 = vector.extract_strided_slice %43 {offsets = [0, 60], sizes = [192, 60], strides = [1, 1]} : vector<192x120xf32> to vector<192x60xf32>
    %46 = arith.maximumf %44, %45 : vector<192x60xf32>
    %47 = vector.shape_cast %46 : vector<192x60xf32> to vector<12x2x8x60xf32>
    %48 = vector.extract_strided_slice %47 {offsets = [0, 0, 0, 0], sizes = [12, 1, 8, 60], strides = [1, 1, 1, 1]} : vector<12x2x8x60xf32> to vector<12x1x8x60xf32>
    %49 = vector.shape_cast %48 : vector<12x1x8x60xf32> to vector<12x8x60xf32>
    %50 = vector.extract_strided_slice %47 {offsets = [0, 1, 0, 0], sizes = [12, 1, 8, 60], strides = [1, 1, 1, 1]} : vector<12x2x8x60xf32> to vector<12x1x8x60xf32>
    %51 = vector.shape_cast %50 : vector<12x1x8x60xf32> to vector<12x8x60xf32>
    %52 = arith.maximumf %49, %51 : vector<12x8x60xf32>
    %cst_36 = arith.constant 0.000000e+00 : f32
    %53 = vector.broadcast %cst_36 : f32 to vector<64x80xf32>
    %54 = vector.extract_strided_slice %52 {offsets = [0, 0, 0], sizes = [8, 8, 60], strides = [1, 1, 1]} : vector<12x8x60xf32> to vector<8x8x60xf32>
    %55 = vector.shape_cast %54 : vector<8x8x60xf32> to vector<64x60xf32>
    %56 = arith.truncf %55 : vector<64x60xf32> to vector<64x60xbf16>
    %c0_37 = arith.constant 0 : index
    %c0_38 = arith.constant 0 : index
    %c0_39 = arith.constant 0 : index
    %57 = vector.load %arg5[%c0_37, %c0_38, %c0_39] : memref<5x60x80xbf16, #tpu.memory_space<vmem>>, vector<1x60x80xbf16>
    %58 = vector.shape_cast %57 : vector<1x60x80xbf16> to vector<60x80xbf16>
    %cst_40 = arith.constant dense<0.000000e+00> : vector<64x80xf32>
    %59 = tpu.matmul %56, %58, %cst_40 {dimension_numbers = #tpu.dot_dimension_numbers<[1], [0], [0], [1], [0, 0, 1, 1], [], []>} : vector<64x60xbf16>, vector<60x80xbf16>, vector<64x80xf32> -> vector<64x80xf32>
    %60 = arith.addf %53, %59 : vector<64x80xf32>
    %61 = vector.extract_strided_slice %52 {offsets = [1, 0, 0], sizes = [8, 8, 60], strides = [1, 1, 1]} : vector<12x8x60xf32> to vector<8x8x60xf32>
    %62 = vector.shape_cast %61 : vector<8x8x60xf32> to vector<64x60xf32>
    %63 = arith.truncf %62 : vector<64x60xf32> to vector<64x60xbf16>
    %c1_41 = arith.constant 1 : index
    %c0_42 = arith.constant 0 : index
    %c0_43 = arith.constant 0 : index
    %64 = vector.load %arg5[%c1_41, %c0_42, %c0_43] : memref<5x60x80xbf16, #tpu.memory_space<vmem>>, vector<1x60x80xbf16>
    %65 = vector.shape_cast %64 : vector<1x60x80xbf16> to vector<60x80xbf16>
    %cst_44 = arith.constant dense<0.000000e+00> : vector<64x80xf32>
    %66 = tpu.matmul %63, %65, %cst_44 {dimension_numbers = #tpu.dot_dimension_numbers<[1], [0], [0], [1], [0, 0, 1, 1], [], []>} : vector<64x60xbf16>, vector<60x80xbf16>, vector<64x80xf32> -> vector<64x80xf32>
    %67 = arith.addf %60, %66 : vector<64x80xf32>
    %68 = vector.extract_strided_slice %52 {offsets = [2, 0, 0], sizes = [8, 8, 60], strides = [1, 1, 1]} : vector<12x8x60xf32> to vector<8x8x60xf32>
    %69 = vector.shape_cast %68 : vector<8x8x60xf32> to vector<64x60xf32>
    %70 = arith.truncf %69 : vector<64x60xf32> to vector<64x60xbf16>
    %c2_45 = arith.constant 2 : index
    %c0_46 = arith.constant 0 : index
    %c0_47 = arith.constant 0 : index
    %71 = vector.load %arg5[%c2_45, %c0_46, %c0_47] : memref<5x60x80xbf16, #tpu.memory_space<vmem>>, vector<1x60x80xbf16>
    %72 = vector.shape_cast %71 : vector<1x60x80xbf16> to vector<60x80xbf16>
    %cst_48 = arith.constant dense<0.000000e+00> : vector<64x80xf32>
    %73 = tpu.matmul %70, %72, %cst_48 {dimension_numbers = #tpu.dot_dimension_numbers<[1], [0], [0], [1], [0, 0, 1, 1], [], []>} : vector<64x60xbf16>, vector<60x80xbf16>, vector<64x80xf32> -> vector<64x80xf32>
    %74 = arith.addf %67, %73 : vector<64x80xf32>
    %75 = vector.extract_strided_slice %52 {offsets = [3, 0, 0], sizes = [8, 8, 60], strides = [1, 1, 1]} : vector<12x8x60xf32> to vector<8x8x60xf32>
    %76 = vector.shape_cast %75 : vector<8x8x60xf32> to vector<64x60xf32>
    %77 = arith.truncf %76 : vector<64x60xf32> to vector<64x60xbf16>
    %c3_49 = arith.constant 3 : index
    %c0_50 = arith.constant 0 : index
    %c0_51 = arith.constant 0 : index
    %78 = vector.load %arg5[%c3_49, %c0_50, %c0_51] : memref<5x60x80xbf16, #tpu.memory_space<vmem>>, vector<1x60x80xbf16>
    %79 = vector.shape_cast %78 : vector<1x60x80xbf16> to vector<60x80xbf16>
    %cst_52 = arith.constant dense<0.000000e+00> : vector<64x80xf32>
    %80 = tpu.matmul %77, %79, %cst_52 {dimension_numbers = #tpu.dot_dimension_numbers<[1], [0], [0], [1], [0, 0, 1, 1], [], []>} : vector<64x60xbf16>, vector<60x80xbf16>, vector<64x80xf32> -> vector<64x80xf32>
    %81 = arith.addf %74, %80 : vector<64x80xf32>
    %82 = vector.extract_strided_slice %52 {offsets = [4, 0, 0], sizes = [8, 8, 60], strides = [1, 1, 1]} : vector<12x8x60xf32> to vector<8x8x60xf32>
    %83 = vector.shape_cast %82 : vector<8x8x60xf32> to vector<64x60xf32>
    %84 = arith.truncf %83 : vector<64x60xf32> to vector<64x60xbf16>
    %c4_53 = arith.constant 4 : index
    %c0_54 = arith.constant 0 : index
    %c0_55 = arith.constant 0 : index
    %85 = vector.load %arg5[%c4_53, %c0_54, %c0_55] : memref<5x60x80xbf16, #tpu.memory_space<vmem>>, vector<1x60x80xbf16>
    %86 = vector.shape_cast %85 : vector<1x60x80xbf16> to vector<60x80xbf16>
    %cst_56 = arith.constant dense<0.000000e+00> : vector<64x80xf32>
    %87 = tpu.matmul %84, %86, %cst_56 {dimension_numbers = #tpu.dot_dimension_numbers<[1], [0], [0], [1], [0, 0, 1, 1], [], []>} : vector<64x60xbf16>, vector<60x80xbf16>, vector<64x80xf32> -> vector<64x80xf32>
    %88 = arith.addf %81, %87 : vector<64x80xf32>
    %c0_57 = arith.constant 0 : index
    %c0_58 = arith.constant 0 : index
    %89 = vector.load %arg6[%c0_57, %c0_58] : memref<1x80xf32, #tpu.memory_space<vmem>>, vector<1x80xf32>
    %90 = vector.broadcast %89 : vector<1x80xf32> to vector<64x80xf32>
    %91 = arith.addf %88, %90 : vector<64x80xf32>
    %cst_59 = arith.constant 0.000000e+00 : f32
    %92 = vector.broadcast %cst_59 : f32 to vector<64x80xf32>
    %93 = arith.maximumf %91, %92 : vector<64x80xf32>
    %94 = arith.truncf %93 : vector<64x80xf32> to vector<64x80xbf16>
    %c0_60 = arith.constant 0 : index
    %c0_61 = arith.constant 0 : index
    %95 = vector.load %arg7[%c0_60, %c0_61] : memref<80x80xbf16, #tpu.memory_space<vmem>>, vector<80x80xbf16>
    %cst_62 = arith.constant dense<0.000000e+00> : vector<64x80xf32>
    %96 = tpu.matmul %94, %95, %cst_62 {dimension_numbers = #tpu.dot_dimension_numbers<[1], [0], [0], [1], [0, 0, 1, 1], [], []>} : vector<64x80xbf16>, vector<80x80xbf16>, vector<64x80xf32> -> vector<64x80xf32>
    %97 = vector.extract_strided_slice %96 {offsets = [0, 0], sizes = [64, 40], strides = [1, 1]} : vector<64x80xf32> to vector<64x40xf32>
    %98 = vector.extract_strided_slice %96 {offsets = [0, 40], sizes = [64, 40], strides = [1, 1]} : vector<64x80xf32> to vector<64x40xf32>
    %99 = arith.maximumf %97, %98 : vector<64x40xf32>
    %100 = vector.shape_cast %99 : vector<64x40xf32> to vector<4x2x8x40xf32>
    %101 = vector.extract_strided_slice %100 {offsets = [0, 0, 0, 0], sizes = [4, 1, 8, 40], strides = [1, 1, 1, 1]} : vector<4x2x8x40xf32> to vector<4x1x8x40xf32>
    %102 = vector.shape_cast %101 : vector<4x1x8x40xf32> to vector<4x8x40xf32>
    %103 = vector.extract_strided_slice %100 {offsets = [0, 1, 0, 0], sizes = [4, 1, 8, 40], strides = [1, 1, 1, 1]} : vector<4x2x8x40xf32> to vector<4x1x8x40xf32>
    %104 = vector.shape_cast %103 : vector<4x1x8x40xf32> to vector<4x8x40xf32>
    %105 = arith.maximumf %102, %104 : vector<4x8x40xf32>
    %cst_63 = arith.constant 0.000000e+00 : f32
    %106 = vector.broadcast %cst_63 : f32 to vector<8x100xf32>
    %107 = vector.extract_strided_slice %105 {offsets = [0, 0, 0], sizes = [1, 8, 40], strides = [1, 1, 1]} : vector<4x8x40xf32> to vector<1x8x40xf32>
    %108 = vector.shape_cast %107 : vector<1x8x40xf32> to vector<8x40xf32>
    %109 = arith.truncf %108 : vector<8x40xf32> to vector<8x40xbf16>
    %c0_64 = arith.constant 0 : index
    %c0_65 = arith.constant 0 : index
    %c0_66 = arith.constant 0 : index
    %110 = vector.load %arg8[%c0_64, %c0_65, %c0_66] : memref<4x40x100xbf16, #tpu.memory_space<vmem>>, vector<1x40x100xbf16>
    %111 = vector.shape_cast %110 : vector<1x40x100xbf16> to vector<40x100xbf16>
    %cst_67 = arith.constant dense<0.000000e+00> : vector<8x100xf32>
    %112 = tpu.matmul %109, %111, %cst_67 {dimension_numbers = #tpu.dot_dimension_numbers<[1], [0], [0], [1], [0, 0, 1, 1], [], []>} : vector<8x40xbf16>, vector<40x100xbf16>, vector<8x100xf32> -> vector<8x100xf32>
    %113 = arith.addf %106, %112 : vector<8x100xf32>
    %114 = vector.extract_strided_slice %105 {offsets = [1, 0, 0], sizes = [1, 8, 40], strides = [1, 1, 1]} : vector<4x8x40xf32> to vector<1x8x40xf32>
    %115 = vector.shape_cast %114 : vector<1x8x40xf32> to vector<8x40xf32>
    %116 = arith.truncf %115 : vector<8x40xf32> to vector<8x40xbf16>
    %c1_68 = arith.constant 1 : index
    %c0_69 = arith.constant 0 : index
    %c0_70 = arith.constant 0 : index
    %117 = vector.load %arg8[%c1_68, %c0_69, %c0_70] : memref<4x40x100xbf16, #tpu.memory_space<vmem>>, vector<1x40x100xbf16>
    %118 = vector.shape_cast %117 : vector<1x40x100xbf16> to vector<40x100xbf16>
    %cst_71 = arith.constant dense<0.000000e+00> : vector<8x100xf32>
    %119 = tpu.matmul %116, %118, %cst_71 {dimension_numbers = #tpu.dot_dimension_numbers<[1], [0], [0], [1], [0, 0, 1, 1], [], []>} : vector<8x40xbf16>, vector<40x100xbf16>, vector<8x100xf32> -> vector<8x100xf32>
    %120 = arith.addf %113, %119 : vector<8x100xf32>
    %121 = vector.extract_strided_slice %105 {offsets = [2, 0, 0], sizes = [1, 8, 40], strides = [1, 1, 1]} : vector<4x8x40xf32> to vector<1x8x40xf32>
    %122 = vector.shape_cast %121 : vector<1x8x40xf32> to vector<8x40xf32>
    %123 = arith.truncf %122 : vector<8x40xf32> to vector<8x40xbf16>
    %c2_72 = arith.constant 2 : index
    %c0_73 = arith.constant 0 : index
    %c0_74 = arith.constant 0 : index
    %124 = vector.load %arg8[%c2_72, %c0_73, %c0_74] : memref<4x40x100xbf16, #tpu.memory_space<vmem>>, vector<1x40x100xbf16>
    %125 = vector.shape_cast %124 : vector<1x40x100xbf16> to vector<40x100xbf16>
    %cst_75 = arith.constant dense<0.000000e+00> : vector<8x100xf32>
    %126 = tpu.matmul %123, %125, %cst_75 {dimension_numbers = #tpu.dot_dimension_numbers<[1], [0], [0], [1], [0, 0, 1, 1], [], []>} : vector<8x40xbf16>, vector<40x100xbf16>, vector<8x100xf32> -> vector<8x100xf32>
    %127 = arith.addf %120, %126 : vector<8x100xf32>
    %128 = vector.extract_strided_slice %105 {offsets = [3, 0, 0], sizes = [1, 8, 40], strides = [1, 1, 1]} : vector<4x8x40xf32> to vector<1x8x40xf32>
    %129 = vector.shape_cast %128 : vector<1x8x40xf32> to vector<8x40xf32>
    %130 = arith.truncf %129 : vector<8x40xf32> to vector<8x40xbf16>
    %c3_76 = arith.constant 3 : index
    %c0_77 = arith.constant 0 : index
    %c0_78 = arith.constant 0 : index
    %131 = vector.load %arg8[%c3_76, %c0_77, %c0_78] : memref<4x40x100xbf16, #tpu.memory_space<vmem>>, vector<1x40x100xbf16>
    %132 = vector.shape_cast %131 : vector<1x40x100xbf16> to vector<40x100xbf16>
    %cst_79 = arith.constant dense<0.000000e+00> : vector<8x100xf32>
    %133 = tpu.matmul %130, %132, %cst_79 {dimension_numbers = #tpu.dot_dimension_numbers<[1], [0], [0], [1], [0, 0, 1, 1], [], []>} : vector<8x40xbf16>, vector<40x100xbf16>, vector<8x100xf32> -> vector<8x100xf32>
    %134 = arith.addf %127, %133 : vector<8x100xf32>
    %c0_80 = arith.constant 0 : index
    %c0_81 = arith.constant 0 : index
    %135 = vector.load %arg9[%c0_80, %c0_81] : memref<1x100xf32, #tpu.memory_space<vmem>>, vector<1x100xf32>
    %136 = vector.broadcast %135 : vector<1x100xf32> to vector<8x100xf32>
    %137 = arith.addf %134, %136 : vector<8x100xf32>
    %cst_82 = arith.constant 0.000000e+00 : f32
    %138 = vector.broadcast %cst_82 : f32 to vector<8x100xf32>
    %139 = arith.maximumf %137, %138 : vector<8x100xf32>
    %140 = arith.truncf %139 : vector<8x100xf32> to vector<8x100xbf16>
    %c0_83 = arith.constant 0 : index
    %c0_84 = arith.constant 0 : index
    %141 = vector.load %arg10[%c0_83, %c0_84] : memref<100x10xbf16, #tpu.memory_space<vmem>>, vector<100x10xbf16>
    %cst_85 = arith.constant dense<0.000000e+00> : vector<8x10xf32>
    %142 = tpu.matmul %140, %141, %cst_85 {dimension_numbers = #tpu.dot_dimension_numbers<[1], [0], [0], [1], [0, 0, 1, 1], [], []>} : vector<8x100xbf16>, vector<100x10xbf16>, vector<8x10xf32> -> vector<8x10xf32>
    %c0_86 = arith.constant 0 : index
    %c0_87 = arith.constant 0 : index
    %143 = vector.load %arg11[%c0_86, %c0_87] : memref<1x10xf32, #tpu.memory_space<vmem>>, vector<1x10xf32>
    %144 = vector.broadcast %143 : vector<1x10xf32> to vector<8x10xf32>
    %145 = arith.addf %142, %144 : vector<8x10xf32>
    %cst_88 = arith.constant dense<0xFF800000> : vector<8xf32>
    %146 = vector.multi_reduction <maximumf>, %145, %cst_88 [1] : vector<8x10xf32> to vector<8xf32>
    %147 = vector.shape_cast %146 : vector<8xf32> to vector<8x1xf32>
    %148 = vector.broadcast %147 : vector<8x1xf32> to vector<8x10xf32>
    %149 = arith.subf %145, %148 : vector<8x10xf32>
    %150 = math.exp %149 : vector<8x10xf32>
    %cst_89 = arith.constant dense<0.000000e+00> : vector<8xf32>
    %151 = vector.multi_reduction <add>, %150, %cst_89 [1] : vector<8x10xf32> to vector<8xf32>
    %152 = vector.shape_cast %151 : vector<8xf32> to vector<8x1xf32>
    %153 = math.log %152 : vector<8x1xf32>
    %154 = vector.broadcast %147 : vector<8x1xf32> to vector<8x10xf32>
    %155 = arith.subf %145, %154 : vector<8x10xf32>
    %156 = vector.broadcast %153 : vector<8x1xf32> to vector<8x10xf32>
    %157 = arith.subf %155, %156 : vector<8x10xf32>
    %c0_90 = arith.constant 0 : index
    %c0_91 = arith.constant 0 : index
    %158 = vector.load %arg12[%c0_90, %c0_91] : memref<8x10xf32, #tpu.memory_space<vmem>>, vector<8x10xf32>
    tpu.vector_store %arg12[%c0_90, %c0_91], %157 {strides = array<i32>} : memref<8x10xf32, #tpu.memory_space<vmem>>, vector<8x10xf32>,
    return
  }
  func.func @transform_0(%arg0: i32) -> (i32, i32, i32) {
    %c0_i32 = arith.constant 0 : i32
    %c0_i32_0 = arith.constant 0 : i32
    %c0_i32_1 = arith.constant 0 : i32
    return %c0_i32, %arg0, %c0_i32_0 : i32, i32, i32
  }
  func.func @transform_1(%arg0: i32) -> (i32, i32, i32) {
    %c0_i32 = arith.constant 0 : i32
    %c0_i32_0 = arith.constant 0 : i32
    %c0_i32_1 = arith.constant 0 : i32
    %c0_i32_2 = arith.constant 0 : i32
    return %c0_i32, %c0_i32_0, %c0_i32_1 : i32, i32, i32
  }
  func.func @transform_2(%arg0: i32) -> (i32, i32) {
    %c0_i32 = arith.constant 0 : i32
    %c0_i32_0 = arith.constant 0 : i32
    %c0_i32_1 = arith.constant 0 : i32
    return %c0_i32, %c0_i32_0 : i32, i32
  }
  func.func @transform_3(%arg0: i32) -> (i32, i32) {
    %c0_i32 = arith.constant 0 : i32
    %c0_i32_0 = arith.constant 0 : i32
    %c0_i32_1 = arith.constant 0 : i32
    return %c0_i32, %c0_i32_0 : i32, i32
  }
  func.func @transform_4(%arg0: i32) -> (i32, i32, i32) {
    %c0_i32 = arith.constant 0 : i32
    %c0_i32_0 = arith.constant 0 : i32
    %c0_i32_1 = arith.constant 0 : i32
    %c0_i32_2 = arith.constant 0 : i32
    return %c0_i32, %c0_i32_0, %c0_i32_1 : i32, i32, i32
  }
  func.func @transform_5(%arg0: i32) -> (i32, i32) {
    %c0_i32 = arith.constant 0 : i32
    %c0_i32_0 = arith.constant 0 : i32
    %c0_i32_1 = arith.constant 0 : i32
    return %c0_i32, %c0_i32_0 : i32, i32
  }
  func.func @transform_6(%arg0: i32) -> (i32, i32) {
    %c0_i32 = arith.constant 0 : i32
    %c0_i32_0 = arith.constant 0 : i32
    %c0_i32_1 = arith.constant 0 : i32
    return %c0_i32, %c0_i32_0 : i32, i32
  }
  func.func @transform_7(%arg0: i32) -> (i32, i32, i32) {
    %c0_i32 = arith.constant 0 : i32
    %c0_i32_0 = arith.constant 0 : i32
    %c0_i32_1 = arith.constant 0 : i32
    %c0_i32_2 = arith.constant 0 : i32
    return %c0_i32, %c0_i32_0, %c0_i32_1 : i32, i32, i32
  }
  func.func @transform_8(%arg0: i32) -> (i32, i32) {
    %c0_i32 = arith.constant 0 : i32
    %c0_i32_0 = arith.constant 0 : i32
    %c0_i32_1 = arith.constant 0 : i32
    return %c0_i32, %c0_i32_0 : i32, i32
  }
  func.func @transform_9(%arg0: i32) -> (i32, i32) {
    %c0_i32 = arith.constant 0 : i32
    %c0_i32_0 = arith.constant 0 : i32
    %c0_i32_1 = arith.constant 0 : i32
    return %c0_i32, %c0_i32_0 : i32, i32
  }
  func.func @transform_10(%arg0: i32) -> (i32, i32) {
    %c0_i32 = arith.constant 0 : i32
    %c0_i32_0 = arith.constant 0 : i32
    %c0_i32_1 = arith.constant 0 : i32
    return %c0_i32, %c0_i32_0 : i32, i32
  }
  func.func @transform_11(%arg0: i32) -> (i32, i32) {
    %c0_i32 = arith.constant 0 : i32
    %c0_i32_0 = arith.constant 0 : i32
    return %arg0, %c0_i32 : i32, i32
  }
}

</mosaic_0001>

<bundles_post_ra>
// kernel: net_forward_hbw.1
= control target key start
LH: loop header
LB: loop body
LE: loop exit
PB: predicated region body
PF: predicated region fallthrough
CT: control target
= control target key end

     0   :  { %s5615_s0 = inlined_call_operand.hbm [shape: f32[28,16,28], index: 0, kind: input, shape index: {}]   ;;  %s5616_s1 = inlined_call_operand.hbm [shape: bf16[5,28,120], index: 1, kind: input, shape index: {}]   ;;  %s5617_s2 = inlined_call_operand.vmem [shape: f32[1,120], index: 2, kind: input, shape index: {}]   ;;  %s5618_s3 = inlined_call_operand.hbm [shape: bf16[120,120], index: 3, kind: input, shape index: {}]   ;;  %s5619_s4 = inlined_call_operand.hbm [shape: bf16[5,60,80], index: 4, kind: input, shape index: {}]   ;;  %s5620_s5 = inlined_call_operand.vmem [shape: f32[1,80], index: 5, kind: input, shape index: {}]   ;;  %s5621_s6 = inlined_call_operand.hbm [shape: bf16[80,80], index: 6, kind: input, shape index: {}]   ;;  %s5622_s7 = inlined_call_operand.vmem [shape: bf16[4,40,100], index: 7, kind: input, shape index: {}]   ;;  %s5623_s8 = inlined_call_operand.vmem [shape: f32[1,100], index: 8, kind: input, shape index: {}]   ;;  %s5624_s9 = inlined_call_operand.vmem [shape: bf16[100,10], index: 9, kind: input, shape index: {}]   ;;  %s5625_s10 = inlined_call_operand.vmem [shape: f32[1,10], index: 10, kind: input, shape index: {}]   ;;  %s5626_s11 = inlined_call_operand.hbm [shape: f32[16,10], index: 11, kind: output, shape index: {}]  }
   0x1   :  { %5633 = sst [smem:[#allocation18_spill]] %s5623_s8 }
   0x2   :  { %5634 = sst [smem:[#allocation19_spill]] %s5625_s10 }
   0x3   :  { %5635 = sst [smem:[#allocation20_spill]] %s5626_s11 }
   0x4   :  { %16 = vsyncpa [#allocation3], 0 }
   0x5   :  { %18 = vsyncpa [#allocation3 + $0x1], 0 }
   0x6   :  { %19 = vsyncpa [#allocation6], 0 }
   0x7   :  { %20 = vsyncpa [#allocation9], 0 }
   0x8   :  { %21 = vsyncpa [#allocation4], 0 }
   0x9   :  { %23 = vsyncpa [#allocation4 + $0x1], 0  ;;  %s4824_s17 = smov 0   ;;  %s4826_s18 = smov 0  }
   0xa   :  { %s4828_s19 = smov 0   ;;  %s4830_s20 = smov 0  }
   0xb LB: > { %5636 = sst [smem:[#allocation16_spill]] %s4735_s17  ;;  %s4845_s21 = sadd.s32 4294967295, %s4747_s20   ;;  %s4747_s20 = sphi %s4830_s20, %s5662_s20   ;;  %s4743_s19 = sphi %s4828_s19, %s5661_s19   ;;  %s4739_s18 = sphi %s4826_s18, %s5660_s18   ;;  %s4735_s17 = sphi %s4824_s17, %s5659_s17  }
   0xc   : > { %s3353_s22 = sadd.s32 4294967294, %s4747_s20   ;;  %p49_p0 = scmp.ne.s32.totalorder %s4739_s18, %s4735_s17 }
   0xd   : > { %p5628_p1 = scmp.eq.s32.totalorder %s4845_s21, 0  ;;  %p289_p3 = scmp.eq.s32.totalorder %s3353_s22, 1 }
   0xe   : > { %p3354_p5 = scmp.ge.s32.totalorder %s4747_s20, 1  ;;  %p296_p7 = scmp.lt.s32.totalorder %s4747_s20, 3 }
   0xf   : > { %p4854_p4 = por %p5628_p1, %p49_p0  ;;  %p4859_p6 = por %p289_p3, %p49_p0 }
  0x10   : > { %p4864_p8 = pnand %p3354_p5, %p296_p7  ;;  %s4749_s26 = smov [#allocation5]  }
  0x11   : > { %s5637_s23 = scalar_select %p4854_p4, 1, 0 }
  0x12   : > { %s5638_s24 = scalar_select %p4859_p6, 1, 0 }
  0x13   : > { %s5640_s25 = scalar_select %p4864_p8, 1, 0 }
  0x14   : > { %5639 = sst [smem:[#allocation17_spill]] %s5638_s24  ;;  %s308_s27 = sshll.u32 %s4749_s26, 4  ;;  %s4868_s27 = int_to_ptr.vmem [resolvable:$true] %s308_s27 }
  0x15   : > { %p4309_p9 = pneg %p4864_p8  ;;  %s4750_s29 = smov [#allocation8]  }
  0x16   : > { %s337_s30 = sshll.u32 %s4750_s29, 4  ;;  %s4751_s12 = smov [#allocation7]   ;;  %s4879_s30 = int_to_ptr.vmem [resolvable:$true] %s337_s30 }
  0x17   : > { %p4875_p11 = pnand %p4309_p9, %p5628_p1  ;;  %s4881_s13 = sshll.u32 %s4751_s12, 4  ;;  %s325_s13 = int_to_ptr.vmem [resolvable:$true] %s4881_s13 }
  0x18   : > { %s4531_s16 = scalar_lea.hbm %s5616_s1, 1280 }
  0x19   : > { %p4532_p12 = scmp.ne.s32.totalorder %s5616_s1, %s4531_s16  ;;  %p4891_p13 = pneg %p4875_p11 }
  0x1a   : > { %p4538_p5 = scmp.lt.u32.totalorder %s4531_s16, %s5616_s1 }
  0x1b   : > { %p4534_p0 = pnand %p4891_p13, %p4532_p12 }
  0x1d   : > { %p4535_p3 = pneg %p4534_p0 }
  0x1f   : > { %p4540_p7 = pnand %p4538_p5, %p4535_p3 }
  0x21   : > { %4543 = shalt.err (!%p4540_p7)
}
  0x22   : > { %s4544_s14 = scalar_lea.vmem %s4868_s27, 1280  ;;  %p4552_p2 = scmp.lt.s32.totalorder %s4868_s27, %s4868_s27 }
  0x23   : > { %p4545_p9 = scmp.ne.s32.totalorder %s4868_s27, %s4544_s14  ;;  %p4553_p6 = scmp.lt.s32.totalorder %s4544_s14, %s4544_s14 }
  0x25   : > { %p4547_p10 = pnand %p4545_p9, %p4891_p13  ;;  %p4554_p12 = por %p4553_p6, %p4552_p2 }
  0x27   : > { %p4548_p1 = pneg %p4547_p10 }
  0x29   : > { %p4555_p0 = pnand %p4554_p12, %p4548_p1 }
  0x2b   : > { %4558 = shalt.err (!%p4555_p0)
}
  0x2c   : > { %s4752_s15 = smov 64   ;;  %s4753_s16 = smov 4  }
  0x2d   : > { %4312 = dma.hbm_to_vmem [thread:$0]  (!%p4875_p11), %s5616_s1, 1280, %s4868_s27, [#allocation6], %s4752_s15, %s4752_s15, %s4753_s16  }
  0x2e   : > { %s4559_s14 = scalar_lea.hbm %s5619_s4, 2560 }
  0x2f   : > { %p4560_p1 = scmp.ne.s32.totalorder %s5619_s4, %s4559_s14  ;;  %p4566_p10 = scmp.lt.u32.totalorder %s4559_s14, %s5619_s4 }
  0x31   : > { %p4562_p2 = pnand %p4560_p1, %p4891_p13 }
  0x33   : > { %p4563_p6 = pneg %p4562_p2 }
  0x35   : > { %p4568_p3 = pnand %p4566_p10, %p4563_p6 }
  0x37   : > { %4571 = shalt.err (!%p4568_p3)
}
  0x38   : > { %s4572_s27 = scalar_lea.vmem %s4879_s30, 2560  ;;  %p4580_p12 = scmp.lt.s32.totalorder %s4879_s30, %s4879_s30 }
  0x39   : > { %p4573_p5 = scmp.ne.s32.totalorder %s4879_s30, %s4572_s27  ;;  %p4581_p0 = scmp.lt.s32.totalorder %s4572_s27, %s4572_s27 }
  0x3b   : > { %p4575_p7 = pnand %p4573_p5, %p4891_p13  ;;  %p4582_p1 = por %p4581_p0, %p4580_p12 }
  0x3d   : > { %p4576_p9 = pneg %p4575_p7 }
  0x3f   : > { %p4583_p2 = pnand %p4582_p1, %p4576_p9 }
  0x41   : > { %4586 = shalt.err (!%p4583_p2)
}
  0x42   : > { %4318 = dma.hbm_to_vmem [thread:$0]  (!%p4875_p11), %s5619_s4, 2560, %s4879_s30, [#allocation9], %s4752_s15, %s4752_s15, %s4753_s16  }
  0x43   : > { %s4587_s22 = scalar_lea.hbm %s5618_s3, 960 }
  0x44   : > { %p4588_p6 = scmp.ne.s32.totalorder %s5618_s3, %s4587_s22  ;;  %p4594_p5 = scmp.lt.u32.totalorder %s4587_s22, %s5618_s3 }
  0x46   : > { %p4590_p10 = pnand %p4588_p6, %p4891_p13 }
  0x48   : > { %p4591_p3 = pneg %p4590_p10 }
  0x4a   : > { %p4596_p7 = pnand %p4594_p5, %p4591_p3 }
  0x4c   : > { %4599 = shalt.err (!%p4596_p7)
}
  0x4d   : > { %s4600_s27 = scalar_lea.vmem %s325_s13, 960  ;;  %p4608_p1 = scmp.lt.s32.totalorder %s325_s13, %s325_s13 }
  0x4e   : > { %p4601_p9 = scmp.ne.s32.totalorder %s325_s13, %s4600_s27  ;;  %p4609_p2 = scmp.lt.s32.totalorder %s4600_s27, %s4600_s27 }
  0x50   : > { %p4603_p12 = pnand %p4601_p9, %p4891_p13  ;;  %p4610_p4 = por %p4609_p2, %p4608_p1 }
  0x52   : > { %p4604_p0 = pneg %p4603_p12 }
  0x54   : > { %p4611_p8 = pnand %p4610_p4, %p4604_p0 }
  0x56   : > { %4614 = shalt.err (!%p4611_p8)
}
  0x57   : > { %4315 = dma.hbm_to_vmem [thread:$0]  (!%p4875_p11), %s5618_s3, 960, %s325_s13, [#allocation6], %s4752_s15, %s4752_s15, %s4753_s16  }
  0x58   : > { %s4754_s10 = smov [#allocation10]   ;;  %s4615_s26 = scalar_lea.hbm %s5621_s6, 640 }
  0x59   : > { %s353_s11 = sshll.u32 %s4754_s10, 4  ;;  %p4616_p4 = scmp.ne.s32.totalorder %s5621_s6, %s4615_s26  ;;  %s354_s11 = int_to_ptr.vmem [resolvable:$true] %s353_s11 }
  0x5a   : > { %p4622_p10 = scmp.lt.u32.totalorder %s4615_s26, %s5621_s6 }
  0x5b   : > { %p4618_p8 = pnand %p4616_p4, %p4891_p13 }
  0x5d   : > { %p4619_p6 = pneg %p4618_p8 }
  0x5f   : > { %p4624_p3 = pnand %p4622_p10, %p4619_p6 }
  0x61   : > { %4627 = shalt.err (!%p4624_p3)
}
  0x62   : > { %s4628_s13 = scalar_lea.vmem %s354_s11, 640  ;;  %p4636_p12 = scmp.lt.s32.totalorder %s354_s11, %s354_s11 }
  0x63   : > { %p4629_p5 = scmp.ne.s32.totalorder %s354_s11, %s4628_s13  ;;  %p4637_p0 = scmp.lt.s32.totalorder %s4628_s13, %s4628_s13 }
  0x65   : > { %p4631_p7 = pnand %p4629_p5, %p4891_p13  ;;  %p4638_p1 = por %p4637_p0, %p4636_p12 }
  0x67   : > { %p4632_p9 = pneg %p4631_p7 }
  0x69   : > { %p4639_p2 = pnand %p4638_p1, %p4632_p9 }
  0x6b   : > { %4642 = shalt.err (!%p4639_p2)
}
  0x6c   : > { %4321 = dma.hbm_to_vmem [thread:$0]  (!%p4875_p11), %s5621_s6, 640, %s354_s11, [#allocation9], %s4752_s15, %s4752_s15, %s4753_s16  }
  0x6d   : > { %s4985_s24 = sadd.s32 1, %s4747_s20   ;;  %s36_s28 = sadd.s32 1, %s4743_s19 }
  0x6e   : > { %s33_s10 = ssub.s32 %s4747_s20, %s4985_s24  ;;  %p43_p13 = scmp.ne.s32.totalorder %s4743_s19, %s4739_s18 }
  0x6f   : > { %p34_p4 = scmp.eq.s32.totalorder %s33_s10, 0  ;;  %p44_p8 = scmp.eq.s32.totalorder %s4747_s20, 0 }
  0x70   : > { %p5643_p6 = scmp.eq.s32.totalorder %s4845_s21, 1  ;;  %p4334_p3 = scmp.lt.s32.totalorder %s4747_s20, 2 }
  0x71   : > { %s5001_s22 = scalar_select %p34_p4, %s4743_s19, %s36_s28  }
  0x72   : > { %p4995_p10 = por %p5643_p6, %p43_p13  ;;  %p45_p5 = por %p44_p8, %p43_p13 }
  0x73   : > { %s379_s26 = sand.u32 1, %s4743_s19   ;;  %s3360_s15 = sshll.u32 %s4747_s20, 7 }
  0x74   : > { %s4287_s29 = smul.u32 224, %s379_s26  ;;  %p5005_p11 = pnand %p4334_p3, %p45_p5 }
  0x75   : > { %s5012_s14 = scalar_lea.hbm %s5615_s0, %s3360_s15  ;;  %s5016_s30 = scalar_lea.sflag [#allocation3], %s379_s26 }
  0x76   : > { %s383_s27 = scalar_lea.vmem [#allocation2], %s4287_s29  ;;  %s4643_s8 = scalar_lea.hbm %s5012_s14, 3584 }
  0x77   : > { %s389_s13 = sshll.u32 %s383_s27, 4  ;;  %p4644_p7 = scmp.ne.s32.totalorder %s5012_s14, %s4643_s8  ;;  %s5014_s13 = int_to_ptr.vmem [resolvable:$true] %s389_s13 }
  0x78   : > { %p4645_p9 = pneg %p5005_p11  ;;  %s4648_s15 = scalar_lea.hbm %s5615_s0, 7168 }
  0x79   : > { %p4649_p1 = scmp.lt.u32.totalorder %s5012_s14, %s5615_s0  ;;  %p4650_p2 = scmp.lt.u32.totalorder %s4648_s15, %s4643_s8 }
  0x7a   : > { %p4646_p12 = pnand %p4645_p9, %p4644_p7  ;;  %p4652_p4 = scmp.lt.u32.totalorder %s4643_s8, %s5012_s14 }
  0x7b   : > { %p4651_p13 = por %p4650_p2, %p4649_p1 }
  0x7c   : > { %p4647_p0 = pneg %p4646_p12 }
  0x7d   : > { %p4653_p8 = por %p4652_p4, %p4651_p13 }
  0x7f   : > { %p4654_p6 = pnand %p4653_p8, %p4647_p0 }
  0x81   : > { %4657 = shalt.err (!%p4654_p6)
}
  0x82   : > { %s4658_s26 = scalar_lea.vmem %s5014_s13, 3584  ;;  %s4755_s29 = smov [#allocation2]  }
  0x83   : > { %p4659_p3 = scmp.ne.s32.totalorder %s5014_s13, %s4658_s26  ;;  %s4663_s27 = sshll.u32 %s4755_s29, 4  ;;  %s4664_s27 = int_to_ptr.vmem [resolvable:$false] %s4663_s27 }
  0x84   : > { %s4665_s28 = scalar_lea.vmem %s4664_s27, 7168  ;;  %p4666_p12 = scmp.lt.s32.totalorder %s5014_s13, %s4664_s27 }
  0x85   : > { %p4661_p5 = pnand %p4659_p3, %p4645_p9  ;;  %p4667_p1 = scmp.lt.s32.totalorder %s4665_s28, %s4658_s26 }
  0x87   : > { %p4662_p7 = pneg %p4661_p5  ;;  %p4668_p2 = por %p4667_p1, %p4666_p12 }
  0x89   : > { %p4669_p13 = pnand %p4668_p2, %p4662_p7 }
  0x8b   : > { %4672 = shalt.err (!%p4669_p13)
}
  0x8c   : > { %s4756_s8 = smov 256   ;;  %s4757_s10 = smov 128  }
  0x8d   : > { %s4758_s15 = smov 8   ;;  %p5646_p9 = scmp.ne.s32.totalorder %s5640_s25, 0 }
  0x8e   : > { %4325 = dma.hbm_to_vmem [thread:$0]  (!%p5005_p11), %s5012_s14, 3584, %s5014_s13, %s5016_s30, %s4756_s8, %s4757_s10, %s4758_s15  }
  0x8f   : > { %401 = sbr.rel (%p5646_p9) target bundleno = 2370 (0x942), region = 64  ;;  %s5047_s11 = sand.u32 (!%p5646_p9), 1, %s4739_s18  }
  0x90   : > { %s4288_s12 = smul.u32 (!%p5646_p9), 224, %s5047_s11  ;;  %s404_s26 = scalar_lea.sflag (!%p5646_p9), [#allocation3], %s5047_s11 }
  0x91   : > { %p5647_p0 = scmp.ne.s32.totalorder (!%p5646_p9), %s5637_s23, 0 }
  0x92   : > { %s5051_s29 = scalar_lea.vmem (!%p5646_p9), [#allocation2], %s4288_s12 }
  0x96   : > { %4718 = dma.done.wait (%p5647_p0), %s404_s26, 3584  }
  0x97   : > { %4720 = vsyncadd (%p5647_p0), %s404_s26, 4294963712  ;;  %p5648_p11 = scmp.eq.s32.totalorder %s4845_s21, 0 }
  0x99   : > { %4722 = dma.done.wait (%p5648_p11), [#allocation6], 2240   ;;  %p5649_p4 = pmov %p5648_p11 }
  0x9b   : > { %4724 = vsyncadd (%p5649_p4), [#allocation6], 4294965056  ;;  %p5650_p8 = pmov %p5649_p4 }
  0x9c   : > { %p5651_p6 = pmov %p5649_p4 }
  0x9d   : > { %4726 = dma.done.wait (%p5650_p8), [#allocation9], 3200  }
  0x9e   : > { %4728 = vsyncadd (%p5651_p6), [#allocation9], 4294964096  ;;  %v4465_v0 = vld [vmem:[#allocation5 + $0x10] sm:$0xff]   ;;  %vm593_vm0 = vcmask 1045504   ;;  %v4466_v1 = vld [vmem:[#allocation5 + $0x18] sm:$0x3f]  }
  0x9f   : > { %3812 = vmatprep.subr.bf16.mxu0 %v4465_v0  ;;  %v5066_v2 = vld [vmem:[%s5051_s29 + $0x8] sm:$0xff]  ;;  %v5069_v3 = vld [vmem:[%s5051_s29 + $0x10] sm:$0xff]  ;;  %vm556_vm1 = vcmask 228352   ;;  %v3369_v4 = vld [vmem:[%s5051_s29 + $0x18] sm:$0xff]  ;;  %v595_v7 = vsel %vm593_vm0, %v4466_v1, 0  ;;  %vm1804_vm2 = vcmask 1043456  }
  0xa0   : > { %3813 = vmatpush3.bf16.msra.mxu0 %v4465_v0  ;;  %v528_v5 = vpack.c.bf16 %v5069_v3, %v5066_v2  ;;  %v3370_v6 = vld [vmem:[%s5051_s29 + $0x20] sm:$0xff]  ;;  %v3371_v9 = vld [vmem:[%s5051_s29 + $0x28] sm:$0xff]  ;;  %v5079_v10 = vld [vmem:[%s5051_s29 + $0x30] sm:$0xff]  ;;  %v488_v45 = vpack.c.bf16 %v3369_v4, %v5069_v3  ;;  %vm1767_vm3 = vcmask 982016   ;;  %s4759_s16 = smov 68   ;;  %vm2117_vm4 = vcmask 490496  }
  0xa1   : > { %4276 = vmatprep.subr.msk.bf16.mxu0 %vm593_vm0, %v4466_v1  ;;  %v4467_v8 = vld [vmem:[#allocation5] sm:$0xff]   ;;  %v5082_v11 = vpack.c.bf16 %v3370_v6, %v3369_v4  ;;  %v5085_v12 = vpack.c.bf16 %v5079_v10, %v3371_v9  ;;  %v4468_v13 = vld [vmem:[#allocation5 + $0x8] sm:$0x3f]   ;;  %v3373_v14 = vld [vmem:[%s5051_s29 + $0x38] sm:$0xff]  ;;  %v5154_v46 = vpack.c.bf16 %v3371_v9, %v3370_v6  ;;  %vm2704_vm5 = vcmask 654336   ;;  %s4762_s12 = smov 88  }
  0xa2   : > { %3816 = vmatprep.mubr.msk.bf16.mxu0 %vm556_vm1, %v528_v5  ;;  %v3374_v15 = vld [vmem:[%s5051_s29 + $0x40] sm:$0xff]  ;;  %v3375_v16 = vld [vmem:[%s5051_s29 + $0x48] sm:$0xff]  ;;  %v3376_v17 = vld [vmem:[%s5051_s29 + $0x50] sm:$0xff]  ;;  %v774_v18 = vsel %vm593_vm0, %v4468_v13, 0  ;;  %v5162_v50 = vpack.c.bf16 %v3373_v14, %v5079_v10  ;;  %vm4761_vm6 = vmmov 0   ;;  %vm2854_vm7 = vcmask 326656  }
  0xa3   : > { %v4469_v19 = vld [vmem:[#allocation5 + $0x20] sm:$0xff]   ;;  %v5097_v20 = vpack.c.bf16 %v3374_v15, %v3373_v14  ;;  %v5099_v21 = vpack.c.bf16 %v3376_v17, %v3375_v16  ;;  %v3377_v22 = vld [vmem:[%s5051_s29 + $0x58] sm:$0xff]  ;;  %v3379_v24 = vld [vmem:[%s5051_s29 + $0x68] sm:$0xff]  ;;  %v5164_v51 = vpack.c.bf16 %v3375_v16, %v3374_v15  ;;  %vm3173_vm8 = vcmask 1041408   ;;  %s5652_s13 = sld [smem:[#allocation18_spill]]  ;;  %s5653_s28 = sld [smem:[#allocation19_spill]] }
  0xa4   : > { %3815 = vmatpush3.bf16.msra.mxu0 %v595_v7  ;;  %v3378_v23 = vld [vmem:[%s5051_s29 + $0x60] sm:$0xff]  ;;  %v3380_v25 = vld [vmem:[%s5051_s29 + $0x70] sm:$0xff]  ;;  %v3381_v28 = vld [vmem:[%s5051_s29 + $0x78] sm:$0xff]  ;;  %v5170_v52 = vpack.c.bf16 %v3377_v22, %v3376_v17  ;;  %vm3169_vm9 = vcmask 818176   ;;  %vm3217_vm10 = vcmask 80896   ;;  %s3366_s8 = sshll.u32 %s5047_s11, 3 }
  0xa5   : > { %3840 = vmatprep.subr.bf16.mxu0 %v4467_v8  ;;  %v5109_v26 = vpack.c.bf16 %v3378_v23, %v3377_v22  ;;  %v5111_v27 = vpack.c.bf16 %v3380_v25, %v3379_v24  ;;  %v3382_v29 = vld [vmem:[%s5051_s29 + $0x80] sm:$0xff]  ;;  %v3383_v30 = vld [vmem:[%s5051_s29 + $0x88] sm:$0xff]  ;;  %v3384_v31 = vld [vmem:[%s5051_s29 + $0x90] sm:$0xff]  ;;  %v5172_v53 = vpack.c.bf16 %v3379_v24, %v3378_v23  ;;  %v5178_v54 = vpack.c.bf16 %v3381_v28, %v3380_v25  ;;  %s3646_s10 = sshll.u32 %s4845_s21, 7  ;;  %s461_s15 = scalar_lea.vmem [#allocation11], %s3366_s8 }
  0xa6   : > { %v5121_v32 = vpack.c.bf16 %v3382_v29, %v3381_v28  ;;  %v5123_v33 = vpack.c.bf16 %v3384_v31, %v3383_v30  ;;  %v3385_v34 = vld [vmem:[%s5051_s29 + $0x98] sm:$0xff]  ;;  %v3386_v35 = vld [vmem:[%s5051_s29 + $0xa0] sm:$0xff]  ;;  %v3387_v36 = vld [vmem:[%s5051_s29 + $0xa8] sm:$0xff]  ;;  %v5180_v55 = vpack.c.bf16 %v3383_v30, %v3382_v29  ;;  %s5654_s23 = sld [smem:[#allocation20_spill]]  ;;  %s4763_s21 = smov [#allocation11]  }
  0xa7   : > { %3817 = vmatmul.mubr.msk.bf16.vlgmr.msra.gmra.mrb[0].mxu0 %vm556_vm1, %v5082_v11  ;;  %v3388_v37 = vld [vmem:[%s5051_s29 + $0xb0] sm:$0xff]  ;;  %v5133_v38 = vpack.c.bf16 %v3386_v35, %v3385_v34  ;;  %v3389_v40 = vld [vmem:[%s5051_s29 + $0xb8] sm:$0xff]  ;;  %v5139_v41 = vld [vmem:[%s5051_s29 + $0xc0] sm:$0xff]  ;;  %v5186_v56 = vpack.c.bf16 %v3385_v34, %v3384_v31  ;;  %v5188_v57 = vpack.c.bf16 %v3387_v36, %v3386_v35 }
  0xa8   : > { %3841 = vmatpush3.bf16.msra.mxu0 %v4467_v8  ;;  %3820 = vmatprep.mubr.msk.bf16.mxu0 %vm556_vm1, %v5085_v12  ;;  %v5135_v39 = vpack.c.bf16 %v3388_v37, %v3387_v36  ;;  %v463_v42 = vld [vmem:[%s5051_s29] sm:$0xff]  ;;  %v5147_v43 = vpack.c.bf16 %v5139_v41, %v3389_v40  ;;  %v4470_v47 = vld [vmem:[#allocation5 + $0x28] sm:$0x3f]   ;;  %v4471_v49 = vld [vmem:[#allocation5 + $0x30] sm:$0xff]   ;;  %v5194_v58 = vpack.c.bf16 %v3389_v40, %v3388_v37 }
  0xa9   : > { %4277 = vmatprep.subr.msk.bf16.mxu0 %vm593_vm0, %v4468_v13  ;;  %v487_v44 = vpack.c.bf16 %v5066_v2, %v463_v42  ;;  %v995_v48 = vsel %vm593_vm0, %v4470_v47, 0  ;;  %v4472_v59 = vld [vmem:[#allocation5 + $0x38] sm:$0x3f]   ;;  %v4473_v61 = vld [vmem:[#allocation5 + $0x40] sm:$0xff]   ;;  %v4475_v62 = vld [vmem:[#allocation7] sm:$0xff]  }
  0xaa   : > { %v1240_v60 = vsel %vm593_vm0, %v4472_v59, 0  ;;  %v4476_v63 = vld [vmem:[#allocation7 + $0x8] sm:$0xff]   ;;  %3952 = vmatprep.subr.bf16.mxu1 %v4475_v62  ;;  %v4477_v0 = vld [vmem:[#allocation7 + $0x10] sm:$0xff]   ;;  %v4478_v1 = vld [vmem:[#allocation7 + $0x18] sm:$0xff]  }
  0xab   : > { %3953 = vmatpush3.bf16.msra.mxu1 %v4475_v62  ;;  %v4479_v2 = vld [vmem:[#allocation7 + $0x20] sm:$0xff]   ;;  %v4480_v3 = vld [vmem:[#allocation7 + $0x28] sm:$0xff]   ;;  %v3442_v4 = vld [vmem:[%s5051_s29 + $0xc8] sm:$0xff] }
  0xac   : > { %3843 = vmatpush3.bf16.msra.mxu0 %v774_v18  ;;  %3954 = vmatprep.subr.bf16.mxu1 %v4476_v63  ;;  %v941_v5 = vpack.c.bf16 %v3442_v4, %v5139_v41  ;;  %v4474_v6 = vld [vmem:[#allocation5 + $0x48] sm:$0x3f]   ;;  %v3480_v8 = vld [vmem:[%s5051_s29 + $0xd0] sm:$0xff]  ;;  %v3518_v10 = vld [vmem:[%s5051_s29 + $0xd8] sm:$0xff]  ;;  %s5570_s25 = scalar_lea.hbm %s5654_s23, %s3646_s10 }
  0xad   : > { %3868 = vmatprep.subr.bf16.mxu0 %v4469_v19  ;;  %v1485_v7 = vsel %vm593_vm0, %v4474_v6, 0  ;;  %v1186_v9 = vpack.c.bf16 %v3480_v8, %v3442_v4  ;;  %v4482_v13 = vld [vmem:[#allocation7 + $0x38] ss:$0 sps:$4 sm:$0xff]   ;;  %v5278_v15 = vld [vmem:[%s5617_s2] ss:$0 sm:$0xff] }
  0xae   : > { %v1806_v14 = vsel %vm1804_vm2, %v4482_v13, 0 }
  0xaf   : > { %3821 = vmatmul.mubr.msk.bf16.gmra.mrb[4].mxu0 %vm556_vm1, %v5097_v20  ;;  %3955 = vmatpush3.bf16.msra.mxu1 %v4476_v63 }
  0xb0   : > { %3824 = vmatprep.mubr.msk.bf16.mxu0 %vm556_vm1, %v5099_v21  ;;  %3956 = vmatprep.subr.bf16.mxu1 %v4477_v0 }
  0xb3   : > { %3957 = vmatpush3.bf16.msra.mxu1 %v4477_v0 }
  0xb4   : > { %3958 = vmatprep.subr.bf16.mxu1 %v4478_v1 }
  0xb7   : > { %3825 = vmatmul.mubr.msk.bf16.gmra.mrb[8].mxu0 %vm556_vm1, %v5109_v26  ;;  %3959 = vmatpush3.bf16.msra.mxu1 %v4478_v1 }
  0xb8   : > { %3828 = vmatprep.mubr.msk.bf16.mxu0 %vm556_vm1, %v5111_v27  ;;  %3960 = vmatprep.subr.bf16.mxu1 %v4479_v2 }
  0xbb   : > { %3961 = vmatpush3.bf16.msra.mxu1 %v4479_v2 }
  0xbc   : > { %3962 = vmatprep.subr.bf16.mxu1 %v4480_v3 }
  0xbf   : > { %3829 = vmatmul.mubr.msk.bf16.gmra.mrb[12].mxu0 %vm556_vm1, %v5121_v32  ;;  %3963 = vmatpush3.bf16.msra.mxu1 %v4480_v3 }
  0xc0   : > { %3832 = vmatprep.mubr.msk.bf16.mxu0 %vm556_vm1, %v5123_v33 }
  0xc7   : > { %3833 = vmatmul.mubr.msk.bf16.gmra.mrb[16].mxu0 %vm556_vm1, %v5133_v38 }
  0xc8   : > { %3836 = vmatprep.mubr.msk.bf16.mxu0 %vm556_vm1, %v5135_v39 }
  0xcf   : > { %3837 = vmatmul.mubr.msk.bf16.gmra.mrb[20].mxu0 %vm556_vm1, %v5147_v43 }
  0xd0   : > { %3844 = vmatprep.mubr.msk.bf16.mxu0 %vm556_vm1, %v487_v44 }
  0xd7   : > { %3845 = vmatmul.mubr.msk.bf16.vlgmr.msra.gmra.mrb[0].mxu0 %vm556_vm1, %v488_v45 }
  0xd8   : > { %3869 = vmatpush3.bf16.msra.mxu0 %v4469_v19  ;;  %3848 = vmatprep.mubr.msk.bf16.mxu0 %vm556_vm1, %v5154_v46 }
  0xd9   : > { %4278 = vmatprep.subr.msk.bf16.mxu0 %vm593_vm0, %v4470_v47 }
  0xdc   : > { %3871 = vmatpush3.bf16.msra.mxu0 %v995_v48 }
  0xdd   : > { %3896 = vmatprep.subr.bf16.mxu0 %v4471_v49 }
  0xdf   : > { %3849 = vmatmul.mubr.msk.bf16.gmra.mrb[4].mxu0 %vm556_vm1, %v5162_v50 }
  0xe0   : > { %3852 = vmatprep.mubr.msk.bf16.mxu0 %vm556_vm1, %v5164_v51 }
  0xe7   : > { %3853 = vmatmul.mubr.msk.bf16.gmra.mrb[8].mxu0 %vm556_vm1, %v5170_v52 }
  0xe8   : > { %3856 = vmatprep.mubr.msk.bf16.mxu0 %vm556_vm1, %v5172_v53 }
  0xef   : > { %3857 = vmatmul.mubr.msk.bf16.gmra.mrb[12].mxu0 %vm556_vm1, %v5178_v54 }
  0xf0   : > { %3860 = vmatprep.mubr.msk.bf16.mxu0 %vm556_vm1, %v5180_v55 }
  0xf7   : > { %3861 = vmatmul.mubr.msk.bf16.gmra.mrb[16].mxu0 %vm556_vm1, %v5186_v56 }
  0xf8   : > { %3864 = vmatprep.mubr.msk.bf16.mxu0 %vm556_vm1, %v5188_v57 }
  0xff   : > { %3865 = vmatmul.mubr.msk.bf16.gmra.mrb[20].mxu0 %vm556_vm1, %v5194_v58 }
 0x100   : > { %3872 = vmatprep.mubr.msk.bf16.mxu0 %vm556_vm1, %v488_v45 }
 0x107   : > { %3873 = vmatmul.mubr.msk.bf16.vlgmr.msra.gmra.mrb[0].mxu0 %vm556_vm1, %v5154_v46 }
 0x108   : > { %3897 = vmatpush3.bf16.msra.mxu0 %v4471_v49  ;;  %3876 = vmatprep.mubr.msk.bf16.mxu0 %vm556_vm1, %v5162_v50 }
 0x109   : > { %4279 = vmatprep.subr.msk.bf16.mxu0 %vm593_vm0, %v4472_v59 }
 0x10c   : > { %3899 = vmatpush3.bf16.msra.mxu0 %v1240_v60 }
 0x10d   : > { %3924 = vmatprep.subr.bf16.mxu0 %v4473_v61 }
 0x10f   : > { %3877 = vmatmul.mubr.msk.bf16.gmra.mrb[4].mxu0 %vm556_vm1, %v5164_v51 }
 0x110   : > { %3880 = vmatprep.mubr.msk.bf16.mxu0 %vm556_vm1, %v5170_v52 }
 0x117   : > { %3881 = vmatmul.mubr.msk.bf16.gmra.mrb[8].mxu0 %vm556_vm1, %v5172_v53 }
 0x118   : > { %3884 = vmatprep.mubr.msk.bf16.mxu0 %vm556_vm1, %v5178_v54 }
 0x11f   : > { %3885 = vmatmul.mubr.msk.bf16.gmra.mrb[12].mxu0 %vm556_vm1, %v5180_v55 }
 0x120   : > { %3888 = vmatprep.mubr.msk.bf16.mxu0 %vm556_vm1, %v5186_v56 }
 0x127   : > { %3889 = vmatmul.mubr.msk.bf16.gmra.mrb[16].mxu0 %vm556_vm1, %v5188_v57 }
 0x128   : > { %3892 = vmatprep.mubr.msk.bf16.mxu0 %vm556_vm1, %v5194_v58 }
 0x12f   : > { %3893 = vmatmul.mubr.msk.bf16.gmra.mrb[20].mxu0 %vm556_vm1, %v941_v5 }
 0x130   : > { %3900 = vmatprep.mubr.msk.bf16.mxu0 %vm556_vm1, %v5082_v11  ;;  %v1431_v11 = vpack.c.bf16 %v3518_v10, %v3480_v8 }
 0x137   : > { %3901 = vmatmul.mubr.msk.bf16.vlgmr.msra.gmra.mrb[0].mxu0 %vm556_vm1, %v5085_v12  ;;  %v4481_v12 = vld [vmem:[#allocation7 + $0x30] sm:$0xff]  }
 0x138   : > { %3925 = vmatpush3.bf16.msra.mxu0 %v4473_v61  ;;  %3904 = vmatprep.mubr.msk.bf16.mxu0 %vm556_vm1, %v5097_v20 }
 0x139   : > { %4280 = vmatprep.subr.msk.bf16.mxu0 %vm593_vm0, %v4474_v6  ;;  %3964 = vmatprep.subr.bf16.mxu1 %v4481_v12 }
 0x13a   : > { %3965 = vmatpush3.bf16.msra.mxu1 %v4481_v12 }
 0x13b   : > { %4281 = vmatprep.subr.msk.bf16.mxu1 %vm1804_vm2, %v4482_v13 }
 0x13c   : > { %3927 = vmatpush3.bf16.msra.mxu0 %v1485_v7 }
 0x13e   : > { %3967 = vmatpush3.bf16.msra.mxu1 %v1806_v14 }
 0x13f   : > { %3905 = vmatmul.mubr.msk.bf16.gmra.mrb[4].mxu0 %vm556_vm1, %v5099_v21 }
 0x140   : > { %3908 = vmatprep.mubr.msk.bf16.mxu0 %vm556_vm1, %v5109_v26 }
 0x147   : > { %3909 = vmatmul.mubr.msk.bf16.gmra.mrb[8].mxu0 %vm556_vm1, %v5111_v27 }
 0x148   : > { %3912 = vmatprep.mubr.msk.bf16.mxu0 %vm556_vm1, %v5121_v32 }
 0x14f   : > { %3913 = vmatmul.mubr.msk.bf16.gmra.mrb[12].mxu0 %vm556_vm1, %v5123_v33 }
 0x150   : > { %3916 = vmatprep.mubr.msk.bf16.mxu0 %vm556_vm1, %v5133_v38 }
 0x157   : > { %3917 = vmatmul.mubr.msk.bf16.gmra.mrb[16].mxu0 %vm556_vm1, %v5135_v39 }
 0x158   : > { %3920 = vmatprep.mubr.msk.bf16.mxu0 %vm556_vm1, %v5147_v43 }
 0x15f   : > { %3921 = vmatmul.mubr.msk.bf16.gmra.mrb[20].mxu0 %vm556_vm1, %v1186_v9 }
 0x160   : > { %3928 = vmatprep.mubr.msk.bf16.mxu0 %vm556_vm1, %v5154_v46 }
 0x167   : > { %3929 = vmatmul.mubr.msk.bf16.vlgmr.msra.gmra.mrb[0].mxu0 %vm556_vm1, %v5162_v50 }
 0x168   : > { %3932 = vmatprep.mubr.msk.bf16.mxu0 %vm556_vm1, %v5164_v51 }
 0x16f   : > { %3933 = vmatmul.mubr.msk.bf16.gmra.mrb[4].mxu0 %vm556_vm1, %v5170_v52 }
 0x170   : > { %3936 = vmatprep.mubr.msk.bf16.mxu0 %vm556_vm1, %v5172_v53 }
 0x177   : > { %3937 = vmatmul.mubr.msk.bf16.gmra.mrb[8].mxu0 %vm556_vm1, %v5178_v54 }
 0x178   : > { %3940 = vmatprep.mubr.msk.bf16.mxu0 %vm556_vm1, %v5180_v55 }
 0x17f   : > { %3941 = vmatmul.mubr.msk.bf16.gmra.mrb[12].mxu0 %vm556_vm1, %v5186_v56 }
 0x180   : > { %3944 = vmatprep.mubr.msk.bf16.mxu0 %vm556_vm1, %v5188_v57 }
 0x187   : > { %3945 = vmatmul.mubr.msk.bf16.gmra.mrb[16].mxu0 %vm556_vm1, %v5194_v58 }
 0x188   : > { %3948 = vmatprep.mubr.msk.bf16.mxu0 %vm556_vm1, %v941_v5 }
 0x18f   : > { %3949 = vmatmul.mubr.msk.bf16.gmra.mrb[20].mxu0 %vm556_vm1, %v1431_v11 }
 0x23a   : > { %v3930_v16 = vpop.f32.mrb[0].mxu0 }
 0x23b   : > { %v1649_v17 = vadd.f32 %v3930_v16, %v5278_v15  ;;  %v1521_v18 = vpop.f32.mrb[1].mxu0 }
 0x23c   : > { %v1647_v19 = vadd.f32 %v5278_v15, %v1521_v18  ;;  %v3931_v20 = vpop.f32.mrb[2].mxu0 }
 0x23d   : > { %v1650_v21 = vadd.f32 %v3931_v20, %v5278_v15  ;;  %v1524_v22 = vpop.f32.mrb[3].mxu0  ;;  %v1673_v24 = vmax.f32 %v1649_v17, 0.0 }
 0x23e   : > { %v1648_v23 = vadd.f32 %v5278_v15, %v1524_v22  ;;  %v1671_v26 = vmax.f32 %v1647_v19, 0.0 }
 0x23f   : > { %v1674_v25 = vmax.f32 %v1650_v21, 0.0 }
 0x240   : > { %v1672_v27 = vmax.f32 %v1648_v23, 0.0 }
 0x241   : > { %v1696_v28 = vpack.c.bf16 %v1674_v25, %v1673_v24 }
 0x242   : > { %v3934_v29 = vpop.f32.mrb[4].mxu0  ;;  %v1695_v30 = vpack.c.bf16 %v1672_v27, %v1671_v26 }
 0x243   : > { %v1653_v31 = vadd.f32 %v3934_v29, %v5278_v15  ;;  %v1537_v32 = vpop.f32.mrb[5].mxu0 }
 0x244   : > { %v1651_v33 = vadd.f32 %v5278_v15, %v1537_v32  ;;  %v3935_v34 = vpop.f32.mrb[6].mxu0  ;;  %3968 = vmatprep.mubr.msk.bf16.mxu1 %vm1767_vm3, %v1695_v30 }
 0x245   : > { %v1654_v35 = vadd.f32 %v3935_v34, %v5278_v15  ;;  %v1540_v36 = vpop.f32.mrb[7].mxu0  ;;  %3969 = vmatmul.mubr.msk.bf16.vlgmr.msra.gmra.mrb[0].mxu1 %vm1767_vm3, %v1696_v28  ;;  %v1677_v38 = vmax.f32 %v1653_v31, 0.0 }
 0x246   : > { %v1652_v37 = vadd.f32 %v5278_v15, %v1540_v36  ;;  %v1675_v40 = vmax.f32 %v1651_v33, 0.0 }
 0x247   : > { %v1678_v39 = vmax.f32 %v1654_v35, 0.0 }
 0x248   : > { %v1676_v41 = vmax.f32 %v1652_v37, 0.0  ;;  %v4483_v37 = vld [vmem:[#allocation8 + $0x20] sm:$0xff]  }
 0x249   : > { %v1698_v42 = vpack.c.bf16 %v1678_v39, %v1677_v38  ;;  %v4484_v38 = vld [vmem:[#allocation8 + $0x28] sm:$0xff]   ;;  %3992 = vmatprep.subr.bf16.mxu1 %v4483_v37 }
 0x24a   : > { %v1697_v43 = vpack.c.bf16 %v1676_v41, %v1675_v40  ;;  %v3938_v44 = vpop.f32.mrb[8].mxu0  ;;  %3993 = vmatpush3.bf16.msra.mxu1 %v4483_v37 }
 0x24b   : > { %v1657_v45 = vadd.f32 %v3938_v44, %v5278_v15  ;;  %v1553_v46 = vpop.f32.mrb[9].mxu0  ;;  %3994 = vmatprep.subr.bf16.mxu1 %v4484_v38  ;;  %v4485_v44 = vld [vmem:[#allocation8 + $0x30] sm:$0xff]  }
 0x24c   : > { %v1655_v47 = vadd.f32 %v5278_v15, %v1553_v46  ;;  %v3939_v48 = vpop.f32.mrb[10].mxu0  ;;  %3972 = vmatprep.mubr.msk.bf16.mxu1 %vm1767_vm3, %v1697_v43 }
 0x24d   : > { %v1658_v49 = vadd.f32 %v3939_v48, %v5278_v15  ;;  %v1556_v50 = vpop.f32.mrb[11].mxu0  ;;  %3973 = vmatmul.mubr.msk.bf16.gmra.mrb[4].mxu1 %vm1767_vm3, %v1698_v42  ;;  %v1681_v52 = vmax.f32 %v1657_v45, 0.0 }
 0x24e   : > { %v1656_v51 = vadd.f32 %v5278_v15, %v1556_v50  ;;  %v1679_v54 = vmax.f32 %v1655_v47, 0.0  ;;  %3995 = vmatpush3.bf16.msra.mxu1 %v4484_v38  ;;  %v4486_v50 = vld [vmem:[#allocation8 + $0x38] sm:$0x3f]  }
 0x24f   : > { %v1682_v53 = vmax.f32 %v1658_v49, 0.0  ;;  %3996 = vmatprep.subr.bf16.mxu1 %v4485_v44 }
 0x250   : > { %v1680_v55 = vmax.f32 %v1656_v51, 0.0 }
 0x251   : > { %v1700_v56 = vpack.c.bf16 %v1682_v53, %v1681_v52  ;;  %v2131_v52 = vsel %vm593_vm0, %v4486_v50, 0 }
 0x252   : > { %v1699_v57 = vpack.c.bf16 %v1680_v55, %v1679_v54  ;;  %v3942_v58 = vpop.f32.mrb[12].mxu0  ;;  %3997 = vmatpush3.bf16.msra.mxu1 %v4485_v44 }
 0x253   : > { %v1661_v59 = vadd.f32 %v3942_v58, %v5278_v15  ;;  %v1569_v60 = vpop.f32.mrb[13].mxu0  ;;  %4282 = vmatprep.subr.msk.bf16.mxu1 %vm593_vm0, %v4486_v50  ;;  %v4488_v50 = vld [vmem:[#allocation8 + $0x8] sm:$0xff]  }
 0x254   : > { %v1659_v61 = vadd.f32 %v5278_v15, %v1569_v60  ;;  %v3943_v62 = vpop.f32.mrb[14].mxu0  ;;  %3976 = vmatprep.mubr.msk.bf16.mxu1 %vm1767_vm3, %v1699_v57 }
 0x255   : > { %v1662_v63 = vadd.f32 %v3943_v62, %v5278_v15  ;;  %v1572_v0 = vpop.f32.mrb[15].mxu0  ;;  %3977 = vmatmul.mubr.msk.bf16.gmra.mrb[8].mxu1 %vm1767_vm3, %v1700_v56  ;;  %v1685_v2 = vmax.f32 %v1661_v59, 0.0  ;;  %v5338_v59 = vld [vmem:[#allocation8] sm:$0xff]  }
 0x256   : > { %v1660_v1 = vadd.f32 %v5278_v15, %v1572_v0  ;;  %v1683_v4 = vmax.f32 %v1659_v61, 0.0  ;;  %3999 = vmatpush3.bf16.msra.mxu1 %v2131_v52 }
 0x257   : > { %v1686_v3 = vmax.f32 %v1662_v63, 0.0  ;;  %4008 = vmatprep.subr.bf16.mxu1 %v5338_v59 }
 0x258   : > { %v1684_v5 = vmax.f32 %v1660_v1, 0.0 }
 0x259   : > { %v1702_v6 = vpack.c.bf16 %v1686_v3, %v1685_v2 }
 0x25a   : > { %v1701_v7 = vpack.c.bf16 %v1684_v5, %v1683_v4  ;;  %v3946_v8 = vpop.f32.mrb[16].mxu0 }
 0x25b   : > { %v1665_v9 = vadd.f32 %v3946_v8, %v5278_v15  ;;  %v1585_v10 = vpop.f32.mrb[17].mxu0 }
 0x25c   : > { %v1663_v11 = vadd.f32 %v5278_v15, %v1585_v10  ;;  %v3947_v12 = vpop.f32.mrb[18].mxu0  ;;  %3980 = vmatprep.mubr.msk.bf16.mxu1 %vm1767_vm3, %v1701_v7 }
 0x25d   : > { %v1666_v13 = vadd.f32 %v3947_v12, %v5278_v15  ;;  %v1588_v14 = vpop.f32.mrb[19].mxu0  ;;  %3981 = vmatmul.mubr.msk.bf16.gmra.mrb[12].mxu1 %vm1767_vm3, %v1702_v6  ;;  %v1689_v17 = vmax.f32 %v1665_v9, 0.0 }
 0x25e   : > { %v1664_v16 = vadd.f32 %v5278_v15, %v1588_v14  ;;  %v1687_v19 = vmax.f32 %v1663_v11, 0.0 }
 0x25f   : > { %v1690_v18 = vmax.f32 %v1666_v13, 0.0 }
 0x260   : > { %v1688_v20 = vmax.f32 %v1664_v16, 0.0 }
 0x261   : > { %v1704_v21 = vpack.c.bf16 %v1690_v18, %v1689_v17 }
 0x262   : > { %v1703_v22 = vpack.c.bf16 %v1688_v20, %v1687_v19  ;;  %v3950_v23 = vpop.f32.mrb[20].mxu0 }
 0x263   : > { %v1669_v24 = vadd.f32 %v3950_v23, %v5278_v15  ;;  %v1601_v25 = vpop.f32.mrb[21].mxu0 }
 0x264   : > { %v1667_v26 = vadd.f32 %v5278_v15, %v1601_v25  ;;  %v3951_v27 = vpop.f32.mrb[22].mxu0  ;;  %3984 = vmatprep.mubr.msk.bf16.mxu1 %vm1767_vm3, %v1703_v22 }
 0x265   : > { %v1670_v28 = vadd.f32 %v3951_v27, %v5278_v15  ;;  %v1604_v29 = vpop.f32.mrb[23].mxu0  ;;  %3985 = vmatmul.mubr.msk.bf16.gmra.mrb[16].mxu1 %vm1767_vm3, %v1704_v21  ;;  %v1693_v31 = vmax.f32 %v1669_v24, 0.0 }
 0x266   : > { %v1668_v30 = vadd.f32 %v5278_v15, %v1604_v29  ;;  %v1691_v33 = vmax.f32 %v1667_v26, 0.0 }
 0x267   : > { %v1694_v32 = vmax.f32 %v1670_v28, 0.0 }
 0x268   : > { %v1692_v34 = vmax.f32 %v1668_v30, 0.0 }
 0x269   : > { %v1706_v35 = vpack.c.bf16 %v1694_v32, %v1693_v31 }
 0x26a   : > { %v1705_v36 = vpack.c.bf16 %v1692_v34, %v1691_v33 }
 0x26c   : > { %3988 = vmatprep.mubr.msk.bf16.mxu1 %vm1767_vm3, %v1705_v36 }
 0x26d   : > { %3989 = vmatmul.mubr.msk.bf16.gmra.mrb[20].mxu1 %vm1767_vm3, %v1706_v35 }
 0x318   : > { %v3970_v39 = vpop.f32.mrb[0].mxu1 }
 0x319   : > { %v5316_v40 = vpop.f32.mrb[1].mxu1 }
 0x31a   : > { %v3971_v15 = vpop.f32.mrb[2].mxu1 }
 0x31b   : > { %v5318_v41 = vpop.f32.mrb[3].mxu1  ;;  %v4385_v42 = vpack.i.bf16 %v3971_v15, %v3970_v39 }
 0x31c   : > { %v4425_v43 = vpack.i.bf16 %v5318_v41, %v5316_v40 }
 0x31d   : > { %4386 = vrot.lane.b32.xlu0 %v4385_v42, %s4759_s16 }
 0x320   : > { %v3974_v45 = vpop.f32.mrb[4].mxu1 }
 0x321   : > { %v5323_v46 = vpop.f32.mrb[5].mxu1 }
 0x322   : > { %v3975_v47 = vpop.f32.mrb[6].mxu1 }
 0x323   : > { %v1861_v48 = vpop.f32.mrb[7].mxu1  ;;  %v4395_v49 = vpack.i.bf16 %v3975_v47, %v3974_v45 }
 0x324   : > { %v4390_v51 = vpack.i.bf16 %v1861_v48, %v5323_v46 }
 0x325   : > { %4396 = vrot.lane.b32.xlu1 %v4395_v49, %s4759_s16 }
 0x326   : > { %4391 = vrot.lane.b32.xlu0 %v4390_v51, %s4759_s16 }
 0x328   : > { %v5330_v53 = vpop.f32.mrb[8].mxu1 }
 0x329   : > { %v5332_v54 = vpop.f32.mrb[9].mxu1 }
 0x32a   : > { %v3979_v55 = vpop.f32.mrb[10].mxu1 }
 0x32b   : > { %v4400_v56 = vpack.i.bf16 %v3979_v55, %v5330_v53  ;;  %v1877_v57 = vpop.f32.mrb[11].mxu1 }
 0x32c   : > { %v4405_v58 = vpack.i.bf16 %v1877_v57, %v5332_v54 }
 0x32d   : > { %4401 = vrot.lane.b32.xlu0 %v4400_v56, %s4759_s16 }
 0x32e   : > { %4406 = vrot.lane.b32.xlu1 %v4405_v58, %s4759_s16 }
 0x330   : > { %v5340_v60 = vpop.f32.mrb[12].mxu1 }
 0x331   : > { %v5342_v61 = vpop.f32.mrb[13].mxu1 }
 0x332   : > { %v5345_v62 = vpop.f32.mrb[14].mxu1 }
 0x333   : > { %v4410_v63 = vpack.i.bf16 %v5345_v62, %v5340_v60  ;;  %v5349_v0 = vpop.f32.mrb[15].mxu1 }
 0x334   : > { %v4415_v1 = vpack.i.bf16 %v5349_v0, %v5342_v61 }
 0x335   : > { %4411 = vrot.lane.b32.xlu0 %v4410_v63, %s4759_s16 }
 0x336   : > { %4416 = vrot.lane.b32.xlu1 %v4415_v1, %s4759_s16 }
 0x338   : > { %v5355_v2 = vpop.f32.mrb[16].mxu1 }
 0x339   : > { %4426 = vrot.lane.b32.xlu0 %v4425_v43, %s4759_s16  ;;  %v5358_v3 = vpop.f32.mrb[17].mxu1 }
 0x33a   : > { %v5360_v4 = vpop.f32.mrb[18].mxu1 }
 0x33b   : > { %v4430_v5 = vpack.i.bf16 %v5360_v4, %v5355_v2  ;;  %v5364_v6 = vpop.f32.mrb[19].mxu1 }
 0x33c   : > { %v4420_v7 = vpack.i.bf16 %v5364_v6, %v5358_v3 }
 0x33e   : > { %4421 = vrot.lane.b32.xlu1 %v4420_v7, %s4759_s16  ;;  %v4489_v7 = vld [vmem:[#allocation8 + $0x10] sm:$0xff]  }
 0x340   : > { %v5369_v8 = vpop.f32.mrb[20].mxu1 }
 0x341   : > { %v5371_v9 = vpop.f32.mrb[21].mxu1 }
 0x342   : > { %4431 = vrot.lane.b32.xlu1 %v4430_v5, %s4759_s16  ;;  %v5374_v10 = vpop.f32.mrb[22].mxu1 }
 0x343   : > { %v4440_v11 = vpack.i.bf16 %v5374_v10, %v5369_v8  ;;  %v5378_v12 = vpop.f32.mrb[23].mxu1 }
 0x344   : > { %v4435_v13 = vpack.i.bf16 %v5378_v12, %v5371_v9 }
 0x346   : > { %4441 = vrot.lane.b32.xlu1 %v4440_v11, %s4759_s16  ;;  %4436 = vrot.lane.b32.xlu0 %v4435_v13, %s4759_s16  ;;  %s3232_s16 = scalar_lea.sflag [#allocation4], %s5047_s11 }
 0x38f   : > { %v4387_v14 = vpop.permute.xlu0 %4386 }
 0x390   : > { %v4389_v16 = vunpack.i.h.bf16 %v4387_v14  ;;  %v4388_v17 = vunpack.i.l.bf16 %v4387_v14 }
 0x392   : > { %v2036_v18 = vmax.f32 %v3971_v15, %v4389_v16  ;;  %v2035_v19 = vmax.f32 %v3970_v39, %v4388_v17 }
 0x394   : > { %v5384_v20 = vmax.f32 %v2035_v19, %v2036_v18 }
 0x397   : > { %v4397_v21 = vpop.permute.xlu1 %4396 }
 0x398   : > { %v4399_v22 = vunpack.i.h.bf16 %v4397_v21  ;;  %v4398_v23 = vunpack.i.l.bf16 %v4397_v21  ;;  %v4392_v24 = vpop.permute.xlu0 %4391 }
 0x399   : > { %v4394_v25 = vunpack.i.h.bf16 %v4392_v24  ;;  %v4393_v26 = vunpack.i.l.bf16 %v4392_v24  ;;  %v4491_v24 = vld [vmem:[#allocation8 + $0x40] sm:$0xff]  }
 0x39a   : > { %v2040_v27 = vmax.f32 %v3975_v47, %v4399_v22  ;;  %v2039_v28 = vmax.f32 %v3974_v45, %v4398_v23 }
 0x39b   : > { %v2038_v29 = vmax.f32 %v1861_v48, %v4394_v25  ;;  %v2037_v30 = vmax.f32 %v5323_v46, %v4393_v26 }
 0x39c   : > { %v2060_v31 = vmax.f32 %v2039_v28, %v2040_v27 }
 0x39d   : > { %v2059_v32 = vmax.f32 %v2037_v30, %v2038_v29 }
 0x39f   : > { %v5387_v33 = vpack.c.bf16 %v2060_v31, %v2059_v32  ;;  %v4402_v34 = vpop.permute.xlu0 %4401  ;;  %v2081_v35 = vpack.c.bf16 %v2059_v32, %v5384_v20 }
 0x3a0   : > { %v4404_v36 = vunpack.i.h.bf16 %v4402_v34  ;;  %v4403_v37 = vunpack.i.l.bf16 %v4402_v34  ;;  %v4407_v38 = vpop.permute.xlu1 %4406 }
 0x3a1   : > { %v4409_v39 = vunpack.i.h.bf16 %v4407_v38  ;;  %v4408_v15 = vunpack.i.l.bf16 %v4407_v38  ;;  %4000 = vmatprep.mubr.msk.bf16.mxu1 %vm2117_vm4, %v2081_v35 }
 0x3a2   : > { %v2044_v42 = vmax.f32 %v3979_v55, %v4404_v36  ;;  %v2043_v43 = vmax.f32 %v5330_v53, %v4403_v37 }
 0x3a3   : > { %v2042_v44 = vmax.f32 %v1877_v57, %v4409_v39  ;;  %v2041_v45 = vmax.f32 %v5332_v54, %v4408_v15 }
 0x3a4   : > { %v2062_v46 = vmax.f32 %v2043_v43, %v2044_v42  ;;  %v4492_v43 = vld [vmem:[#allocation8 + $0x48] sm:$0xff]  }
 0x3a5   : > { %v2061_v47 = vmax.f32 %v2041_v45, %v2042_v44 }
 0x3a7   : > { %v5393_v48 = vpack.c.bf16 %v2061_v47, %v2060_v31  ;;  %v4412_v49 = vpop.permute.xlu0 %4411  ;;  %v5395_v51 = vpack.c.bf16 %v2062_v46, %v2061_v47  ;;  %v4497_v47 = vld [vmem:[#allocation8 + $0x70] sm:$0xff]  }
 0x3a8   : > { %v4414_v52 = vunpack.i.h.bf16 %v4412_v49  ;;  %v4413_v56 = vunpack.i.l.bf16 %v4412_v49  ;;  %v4417_v58 = vpop.permute.xlu1 %4416 }
 0x3a9   : > { %v4419_v63 = vunpack.i.h.bf16 %v4417_v58  ;;  %v4418_v1 = vunpack.i.l.bf16 %v4417_v58  ;;  %4001 = vmatmul.mubr.msk.bf16.vlgmr.msra.gmra.mrb[24].mxu1 %vm2117_vm4, %v5393_v48  ;;  %v4502_v58 = vld [vmem:[#allocation8 + $0x98] sm:$0x3f]  }
 0x3aa   : > { %v2048_v53 = vmax.f32 %v5345_v62, %v4414_v52  ;;  %v2047_v54 = vmax.f32 %v5340_v60, %v4413_v56  ;;  %4009 = vmatpush3.bf16.msra.mxu1 %v5338_v59  ;;  %v4490_v59 = vld [vmem:[#allocation8 + $0x18] sm:$0x3f]   ;;  %v4500_v52 = vld [vmem:[#allocation8 + $0x88] sm:$0xff]   ;;  %v4501_v56 = vld [vmem:[#allocation8 + $0x90] sm:$0xff]  }
 0x3ab   : > { %v2046_v55 = vmax.f32 %v5349_v0, %v4419_v63  ;;  %v2045_v57 = vmax.f32 %v5342_v61, %v4418_v1  ;;  %v4427_v5 = vpop.permute.xlu0 %4426  ;;  %4010 = vmatprep.subr.bf16.mxu1 %v4488_v50  ;;  %v2234_v23 = vsel %vm593_vm0, %v4490_v59, 0  ;;  %v4503_v63 = vld [vmem:[#allocation10] sm:$0xff]   ;;  %v4504_v1 = vld [vmem:[#allocation10 + $0x8] sm:$0xff]  }
 0x3ac   : > { %v2064_v11 = vmax.f32 %v2047_v54, %v2048_v53  ;;  %v4429_v13 = vunpack.i.h.bf16 %v4427_v5  ;;  %v4428_v14 = vunpack.i.l.bf16 %v4427_v5  ;;  %v4505_v53 = vld [vmem:[#allocation10 + $0x10] sm:$0xff]   ;;  %v4507_v54 = vld [vmem:[#allocation10 + $0x20] sm:$0xff]  }
 0x3ad   : > { %v2063_v16 = vmax.f32 %v2045_v57, %v2046_v55  ;;  %v3594_v55 = vld [vmem:[%s5620_s5] ss:$0 sm:$0xff] }
 0x3ae   : > { %v2034_v17 = vmax.f32 %v5318_v41, %v4429_v13  ;;  %v2033_v18 = vmax.f32 %v5316_v40, %v4428_v14  ;;  %4011 = vmatpush3.bf16.msra.mxu1 %v4488_v50  ;;  %v4499_v50 = vld [vmem:[#allocation8 + $0x80] sm:$0xff]  }
 0x3af   : > { %v5406_v62 = vpack.c.bf16 %v2063_v16, %v2062_v46  ;;  %4012 = vmatprep.subr.bf16.mxu1 %v4489_v7  ;;  %v5408_v60 = vpack.c.bf16 %v2064_v11, %v2063_v16  ;;  %v4496_v46 = vld [vmem:[#allocation8 + $0x68] sm:$0xff]  }
 0x3b0   : > { %v2057_v0 = vmax.f32 %v2033_v18, %v2034_v17  ;;  %v4422_v61 = vpop.permute.xlu1 %4421 }
 0x3b1   : > { %v4424_v19 = vunpack.i.h.bf16 %v4422_v61  ;;  %v4423_v21 = vunpack.i.l.bf16 %v4422_v61  ;;  %4004 = vmatprep.mubr.msk.bf16.mxu1 %vm2117_vm4, %v5406_v62 }
 0x3b2   : > { %4013 = vmatpush3.bf16.msra.mxu1 %v4489_v7  ;;  %v2069_v22 = vpack.c.bf16 %v5384_v20, %v2057_v0 }
 0x3b3   : > { %v2050_v41 = vmax.f32 %v5364_v6, %v4424_v19  ;;  %v2049_v40 = vmax.f32 %v5358_v3, %v4423_v21  ;;  %4283 = vmatprep.subr.msk.bf16.mxu1 %vm593_vm0, %v4490_v59 }
 0x3b4   : > { %v4432_v25 = vpop.permute.xlu1 %4431 }
 0x3b5   : > { %v2065_v26 = vmax.f32 %v2049_v40, %v2050_v41  ;;  %v4434_v27 = vunpack.i.h.bf16 %v4432_v25  ;;  %v4433_v28 = vunpack.i.l.bf16 %v4432_v25 }
 0x3b6   : > { %4015 = vmatpush3.bf16.msra.mxu1 %v2234_v23 }
 0x3b7   : > { %v2052_v29 = vmax.f32 %v5360_v4, %v4434_v27  ;;  %v2051_v30 = vmax.f32 %v5355_v2, %v4433_v28  ;;  %v2084_v31 = vpack.c.bf16 %v2065_v26, %v2064_v11  ;;  %4024 = vmatprep.subr.bf16.mxu1 %v4491_v24 }
 0x3b8   : > { %v4442_v20 = vpop.permute.xlu1 %4441  ;;  %v4437_v6 = vpop.permute.xlu0 %4436 }
 0x3b9   : > { %v2066_v32 = vmax.f32 %v2051_v30, %v2052_v29  ;;  %v4444_v3 = vunpack.i.h.bf16 %v4442_v20  ;;  %v4443_v34 = vunpack.i.l.bf16 %v4442_v20  ;;  %v4439_v35 = vunpack.i.h.bf16 %v4437_v6  ;;  %4005 = vmatmul.mubr.msk.bf16.gmra.mrb[28].mxu1 %vm2117_vm4, %v2084_v31  ;;  %v4508_v20 = vld [vmem:[%s5622_s7 + $0x14] sm:$0xff]  }
 0x3ba   : > { %v4438_v36 = vunpack.i.l.bf16 %v4437_v6  ;;  %4016 = vmatprep.mubr.msk.bf16.mxu1 %vm2117_vm4, %v2069_v22  ;;  %v4760_v6 = vmov 0.0  }
 0x3bb   : > { %v2056_v37 = vmax.f32 %v5374_v10, %v4444_v3  ;;  %v2055_v38 = vmax.f32 %v5369_v8, %v4443_v34  ;;  %v2054_v4 = vmax.f32 %v5378_v12, %v4439_v35  ;;  %v2301_v2 = vpack.c.bf16 %v2066_v32, %v2065_v26  ;;  %v4493_v10 = vld [vmem:[#allocation8 + $0x50] sm:$0xff]   ;;  %v4494_v8 = vld [vmem:[#allocation8 + $0x58] sm:$0x3f]   ;;  %v4495_v12 = vld [vmem:[#allocation8 + $0x60] sm:$0xff]  }
 0x3bc   : > { %v2053_v39 = vmax.f32 %v5371_v9, %v4438_v36  ;;  %v2338_v9 = vsel %vm593_vm0, %v4494_v8, 0  ;;  %v4510_v3 = vld [vmem:[%s5622_s7 + $0x24] ss:$0 sps:$4 sm:$0xff]  }
 0x3bd   : > { %v2068_v15 = vmax.f32 %v2055_v38, %v2056_v37  ;;  %v2859_v34 = vsel %vm1804_vm2, %v4510_v3, 0 }
 0x3be   : > { %v2067_v42 = vmax.f32 %v2053_v39, %v2054_v4 }
 0x3c0   : > { %v2413_v44 = vpack.c.bf16 %v2067_v42, %v2066_v32  ;;  %v2525_v45 = vpack.c.bf16 %v2068_v15, %v2067_v42  ;;  %v4509_v32 = vld [vmem:[%s5622_s7 + $0x1c] sm:$0xff]  }
 0x3c1   : > { %4017 = vmatmul.mubr.msk.bf16.vlgmr.msra.gmra.mrb[24].mxu1 %vm2117_vm4, %v5387_v33 }
 0x3c2   : > { %4020 = vmatprep.mubr.msk.bf16.mxu1 %vm2117_vm4, %v5395_v51  ;;  %4025 = vmatpush3.bf16.msra.mxu1 %v4491_v24 }
 0x3c3   : > { %4026 = vmatprep.subr.bf16.mxu1 %v4492_v43 }
 0x3c6   : > { %4027 = vmatpush3.bf16.msra.mxu1 %v4492_v43 }
 0x3c7   : > { %4028 = vmatprep.subr.bf16.mxu1 %v4493_v10 }
 0x3c9   : > { %4021 = vmatmul.mubr.msk.bf16.gmra.mrb[28].mxu1 %vm2117_vm4, %v5408_v60 }
 0x3ca   : > { %4029 = vmatpush3.bf16.msra.mxu1 %v4493_v10  ;;  %4032 = vmatprep.mubr.msk.bf16.mxu1 %vm2117_vm4, %v5387_v33  ;;  %v4498_v33 = vld [vmem:[#allocation8 + $0x78] sm:$0x3f]  }
 0x3cb   : > { %4284 = vmatprep.subr.msk.bf16.mxu1 %vm593_vm0, %v4494_v8  ;;  %v2450_v49 = vsel %vm593_vm0, %v4498_v33, 0 }
 0x3ce   : > { %4031 = vmatpush3.bf16.msra.mxu1 %v2338_v9 }
 0x3cf   : > { %4040 = vmatprep.subr.bf16.mxu1 %v4495_v12 }
 0x3d1   : > { %4033 = vmatmul.mubr.msk.bf16.vlgmr.msra.gmra.mrb[24].mxu1 %vm2117_vm4, %v5395_v51 }
 0x3d2   : > { %4036 = vmatprep.mubr.msk.bf16.mxu1 %vm2117_vm4, %v5408_v60  ;;  %4041 = vmatpush3.bf16.msra.mxu1 %v4495_v12 }
 0x3d3   : > { %4042 = vmatprep.subr.bf16.mxu1 %v4496_v46 }
 0x3d6   : > { %4043 = vmatpush3.bf16.msra.mxu1 %v4496_v46 }
 0x3d7   : > { %4044 = vmatprep.subr.bf16.mxu1 %v4497_v47 }
 0x3d9   : > { %4037 = vmatmul.mubr.msk.bf16.gmra.mrb[28].mxu1 %vm2117_vm4, %v2301_v2 }
 0x3da   : > { %4045 = vmatpush3.bf16.msra.mxu1 %v4497_v47  ;;  %4048 = vmatprep.mubr.msk.bf16.mxu1 %vm2117_vm4, %v5393_v48  ;;  %v2562_v48 = vsel %vm593_vm0, %v4502_v58, 0 }
 0x3db   : > { %4285 = vmatprep.subr.msk.bf16.mxu1 %vm593_vm0, %v4498_v33 }
 0x3de   : > { %4047 = vmatpush3.bf16.msra.mxu1 %v2450_v49 }
 0x3df   : > { %4056 = vmatprep.subr.bf16.mxu1 %v4499_v50 }
 0x3e1   : > { %4049 = vmatmul.mubr.msk.bf16.vlgmr.msra.gmra.mrb[24].mxu1 %vm2117_vm4, %v5406_v62 }
 0x3e2   : > { %4052 = vmatprep.mubr.msk.bf16.mxu1 %vm2117_vm4, %v2084_v31  ;;  %4057 = vmatpush3.bf16.msra.mxu1 %v4499_v50 }
 0x3e3   : > { %4058 = vmatprep.subr.bf16.mxu1 %v4500_v52 }
 0x3e6   : > { %4059 = vmatpush3.bf16.msra.mxu1 %v4500_v52 }
 0x3e7   : > { %4060 = vmatprep.subr.bf16.mxu1 %v4501_v56 }
 0x3e9   : > { %4053 = vmatmul.mubr.msk.bf16.gmra.mrb[28].mxu1 %vm2117_vm4, %v2413_v44 }
 0x3ea   : > { %4061 = vmatpush3.bf16.msra.mxu1 %v4501_v56  ;;  %4064 = vmatprep.mubr.msk.bf16.mxu1 %vm2117_vm4, %v5395_v51  ;;  %v4506_v51 = vld [vmem:[#allocation10 + $0x18] sm:$0xff]  }
 0x3eb   : > { %4286 = vmatprep.subr.msk.bf16.mxu1 %vm593_vm0, %v4502_v58 }
 0x3ee   : > { %4063 = vmatpush3.bf16.msra.mxu1 %v2562_v48  ;;  %v4511_v48 = vld [vmem:[%s5622_s7] sm:$0xff]  }
 0x3ef   : > { %4072 = vmatprep.subr.bf16.mxu1 %v4503_v63 }
 0x3f1   : > { %4065 = vmatmul.mubr.msk.bf16.vlgmr.msra.gmra.mrb[24].mxu1 %vm2117_vm4, %v5408_v60 }
 0x3f2   : > { %4068 = vmatprep.mubr.msk.bf16.mxu1 %vm2117_vm4, %v2301_v2  ;;  %4073 = vmatpush3.bf16.msra.mxu1 %v4503_v63 }
 0x3f3   : > { %4074 = vmatprep.subr.bf16.mxu1 %v4504_v1 }
 0x3f6   : > { %4075 = vmatpush3.bf16.msra.mxu1 %v4504_v1 }
 0x3f7   : > { %4076 = vmatprep.subr.bf16.mxu1 %v4505_v53 }
 0x3f9   : > { %4069 = vmatmul.mubr.msk.bf16.gmra.mrb[28].mxu1 %vm2117_vm4, %v2525_v45 }
 0x3fa   : > { %4077 = vmatpush3.bf16.msra.mxu1 %v4505_v53 }
 0x3fb   : > { %4078 = vmatprep.subr.bf16.mxu1 %v4506_v51 }
 0x3fe   : > { %4079 = vmatpush3.bf16.msra.mxu1 %v4506_v51 }
 0x3ff   : > { %4080 = vmatprep.subr.bf16.mxu1 %v4507_v54 }
 0x402   : > { %4081 = vmatpush3.bf16.msra.mxu1 %v4507_v54 }
 0x403   : > { %4090 = vmatprep.subr.bf16.mxu1 %v4760_v6 }
 0x4c4   : > { %v4066_v57 = vpop.f32.mrb[24].mxu1 }
 0x4c5   : > { %v2646_v5 = vadd.f32 %v4066_v57, %v3594_v55  ;;  %v2598_v7 = vpop.f32.mrb[25].mxu1 }
 0x4c6   : > { %v2644_v11 = vadd.f32 %v3594_v55, %v2598_v7  ;;  %v4067_v13 = vpop.f32.mrb[26].mxu1 }
 0x4c7   : > { %v2647_v14 = vadd.f32 %v4067_v13, %v3594_v55  ;;  %v2601_v16 = vpop.f32.mrb[27].mxu1  ;;  %v2654_v18 = vmax.f32 %v2646_v5, 0.0  ;;  %v4512_v5 = vld [vmem:[%s5622_s7 + $0x8] sm:$0xff]   ;;  %v4513_v13 = vld [vmem:[%s5622_s7 + $0x10] ss:$0 sps:$4 sm:$0xff]  }
 0x4c8   : > { %v2645_v17 = vadd.f32 %v3594_v55, %v2601_v16  ;;  %v2652_v59 = vmax.f32 %v2644_v11, 0.0 }
 0x4c9   : > { %v2655_v62 = vmax.f32 %v2647_v14, 0.0 }
 0x4ca   : > { %v2653_v60 = vmax.f32 %v2645_v17, 0.0 }
 0x4cb   : > { %v2661_v0 = vpack.c.bf16 %v2655_v62, %v2654_v18  ;;  %v2920_v62 = vsel %vm1804_vm2, %v4513_v13, 0 }
 0x4cc   : > { %v2660_v61 = vpack.c.bf16 %v2653_v60, %v2652_v59  ;;  %v4070_v19 = vpop.f32.mrb[28].mxu1  ;;  %v4514_v59 = vld [vmem:[%s5622_s7 + $0x28] sm:$0xff]  }
 0x4cd   : > { %v2650_v21 = vadd.f32 %v4070_v19, %v3594_v55  ;;  %v2614_v22 = vpop.f32.mrb[29].mxu1 }
 0x4ce   : > { %v2648_v41 = vadd.f32 %v3594_v55, %v2614_v22  ;;  %v4071_v40 = vpop.f32.mrb[30].mxu1  ;;  %4082 = vmatprep.mubr.msk.bf16.mxu1 %vm2704_vm5, %v2660_v61  ;;  %v4516_v61 = vld [vmem:[%s5622_s7 + $0x38] ss:$0 sps:$4 sm:$0xff]  }
 0x4cf   : > { %v2651_v23 = vadd.f32 %v4071_v40, %v3594_v55  ;;  %v2617_v24 = vpop.f32.mrb[31].mxu1  ;;  %4083 = vmatmul.mubr.msk.bf16.vlgmr.msra.gmra.mrb[32].mxu1 %vm2704_vm5, %v2661_v0  ;;  %v2658_v26 = vmax.f32 %v2650_v21, 0.0  ;;  %v4515_v0 = vld [vmem:[%s5622_s7 + $0x30] sm:$0xff]   ;;  %v2988_v19 = vsel %vm1804_vm2, %v4516_v61, 0  ;;  %v4517_v21 = vld [vmem:[%s5622_s7 + $0x3c] sm:$0xff]  }
 0x4d0   : > { %v2649_v25 = vadd.f32 %v3594_v55, %v2617_v24  ;;  %v2656_v28 = vmax.f32 %v2648_v41, 0.0  ;;  %4091 = vmatpush3.bf16.msra.mxu1 %v4508_v20  ;;  %v4518_v41 = vld [vmem:[%s5622_s7 + $0x44] sm:$0xff]   ;;  %v4519_v40 = vld [vmem:[%s5622_s7 + $0x4c] ss:$0 sps:$4 sm:$0xff]  }
 0x4d1   : > { %v2659_v27 = vmax.f32 %v2651_v23, 0.0  ;;  %4092 = vmatprep.subr.bf16.mxu1 %v4760_v6  ;;  %v3057_v23 = vsel %vm1804_vm2, %v4519_v40, 0 }
 0x4d2   : > { %v2657_v29 = vmax.f32 %v2649_v25, 0.0  ;;  %v4520_v25 = vld [vmem:[%s5624_s9] sm:$0xff]  }
 0x4d3   : > { %v2663_v30 = vpack.c.bf16 %v2659_v27, %v2658_v26  ;;  %v4521_v26 = vld [vmem:[%s5624_s9 + $0x8] sm:$0xff]   ;;  %v4522_v27 = vld [vmem:[%s5624_s9 + $0x10] sm:$0xff]  }
 0x4d4   : > { %v2662_v31 = vpack.c.bf16 %v2657_v29, %v2656_v28  ;;  %4093 = vmatpush3.bf16.msra.mxu1 %v4509_v32  ;;  %v4523_v28 = vld [vmem:[%s5624_s9 + $0x18] sm:$0xff]   ;;  %v4524_v29 = vld [vmem:[%s5624_s9 + $0x20] sm:$0xff]  }
 0x4d5   : > { %4094 = vmatprep.subr.bf16.mxu1 %v4760_v6 }
 0x4d6   : > { %4086 = vmatprep.mubr.msk.bf16.mxu1 %vm2704_vm5, %v2662_v31  ;;  %v4526_v31 = vld [vmem:[%s5624_s9 + $0x30] ss:$0 sps:$4 sm:$0x33]  }
 0x4d7   : > { %4087 = vmatmul.mubr.msk.bf16.gmra.mrb[36].mxu1 %vm2704_vm5, %v2663_v30  ;;  %v4525_v30 = vld [vmem:[%s5624_s9 + $0x28] sm:$0xff]   ;;  %v3175_v20 = vsel %vm3173_vm8, %v4526_v31, 0 }
 0x4d8   : > { %4095 = vmatpush3.bf16.msra.mxu1 %v2859_v34  ;;  %4096 = vmatprep.mubr.msk.bf16.mxu1 %vm4761_vm6, %v4760_v6 }
 0x4d9   : > { %4100 = vmatprep.subr.bf16.mxu1 %v4760_v6 }
 0x5a2   : > { %v4084_v35 = vpop.f32.mrb[32].mxu1 }
 0x5a3   : > { %v2751_v36 = vpop.f32.mrb[33].mxu1 }
 0x5a4   : > { %v4085_v37 = vpop.f32.mrb[34].mxu1 }
 0x5a5   : > { %v4445_v38 = vpack.i.bf16 %v4085_v37, %v4084_v35  ;;  %v2754_v4 = vpop.f32.mrb[35].mxu1 }
 0x5a6   : > { %v4450_v2 = vpack.i.bf16 %v2754_v4, %v2751_v36 }
 0x5a7   : > { %4446 = vrot.lane.b32.xlu0 %v4445_v38, %s4762_s12 }
 0x5a8   : > { %4451 = vrot.lane.b32.xlu1 %v4450_v2, %s4762_s12 }
 0x5aa   : > { %v4088_v39 = vpop.f32.mrb[36].mxu1 }
 0x5ab   : > { %v2767_v15 = vpop.f32.mrb[37].mxu1 }
 0x5ac   : > { %v4089_v42 = vpop.f32.mrb[38].mxu1 }
 0x5ad   : > { %v4460_v43 = vpack.i.bf16 %v4089_v42, %v4088_v39  ;;  %v2770_v44 = vpop.f32.mrb[39].mxu1 }
 0x5ae   : > { %v4455_v45 = vpack.i.bf16 %v2770_v44, %v2767_v15 }
 0x5af   : > { %4461 = vrot.lane.b32.xlu1 %v4460_v43, %s4762_s12 }
 0x5b0   : > { %4456 = vrot.lane.b32.xlu0 %v4455_v45, %s4762_s12  ;;  %v3635_v45 = vld [vmem:[%s5652_s13] ss:$0 sm:$0xff]  ;;  %s3245_s12 = sshll.u32 %s461_s15, 4  ;;  %s4677_s13 = sshll.u32 %s4763_s21, 4  ;;  %s5572_s12 = int_to_ptr.vmem [resolvable:$true] %s3245_s12  ;;  %s4678_s13 = int_to_ptr.vmem [resolvable:$false] %s4677_s13 }
 0x5b1   : > { %s4673_s14 = scalar_lea.vmem %s5572_s12, 128  ;;  %s4679_s30 = scalar_lea.vmem %s4678_s13, 256 }
 0x5b2   : > { %p4674_p3 = scmp.ne.s32.totalorder %s5572_s12, %s4673_s14  ;;  %p4680_p12 = scmp.lt.s32.totalorder %s5572_s12, %s4678_s13 }
 0x5b3   : > { %p4681_p1 = scmp.lt.s32.totalorder %s4679_s30, %s4673_s14 }
 0x5b4   : > { %p4675_p5 = pnand %p4674_p3, %p4995_p10 }
 0x5b5   : > { %p4682_p2 = por %p4681_p1, %p4680_p12 }
 0x5b6   : > { %p4676_p7 = pneg %p4675_p5 }
 0x5b8   : > { %p4683_p13 = pnand %p4682_p2, %p4676_p7 }
 0x619   : > { %v4447_v10 = vpop.permute.xlu0 %4446 }
 0x61a   : > { %v4449_v8 = vunpack.i.h.bf16 %v4447_v10  ;;  %v4448_v9 = vunpack.i.l.bf16 %v4447_v10  ;;  %v4452_v12 = vpop.permute.xlu1 %4451 }
 0x61b   : > { %v4454_v46 = vunpack.i.h.bf16 %v4452_v12  ;;  %v4453_v47 = vunpack.i.l.bf16 %v4452_v12 }
 0x61c   : > { %v2817_v33 = vmax.f32 %v4085_v37, %v4449_v8  ;;  %v2816_v49 = vmax.f32 %v4084_v35, %v4448_v9 }
 0x61d   : > { %v2815_v50 = vmax.f32 %v2754_v4, %v4454_v46  ;;  %v2814_v52 = vmax.f32 %v2751_v36, %v4453_v47 }
 0x61e   : > { %v2823_v56 = vmax.f32 %v2816_v49, %v2817_v33  ;;  %v3636_v49 = vld [vmem:[%s5653_s28] ss:$0 sm:$0xff] }
 0x61f   : > { %v2822_v58 = vmax.f32 %v2814_v52, %v2815_v50 }
 0x620   : > { %v2832_v63 = vpack.c.bf16 %v2823_v56, %v2823_v56 }
 0x621   : > { %v4462_v1 = vpop.permute.xlu1 %4461  ;;  %v2826_v60 = vpack.c.bf16 %v2822_v58, %v2822_v58 }
 0x622   : > { %v4464_v53 = vunpack.i.h.bf16 %v4462_v1  ;;  %v4463_v51 = vunpack.i.l.bf16 %v4462_v1  ;;  %4097 = vmatmul.mubr.msk.bf16.vlgmr.msra.gmra.mrb[40].mxu1 %vm2854_vm7, %v2832_v63  ;;  %v4457_v54 = vpop.permute.xlu0 %4456 }
 0x623   : > { %4101 = vmatpush3.bf16.msra.mxu1 %v4511_v48  ;;  %v4459_v55 = vunpack.i.h.bf16 %v4457_v54  ;;  %v4458_v57 = vunpack.i.l.bf16 %v4457_v54  ;;  %4106 = vmatprep.mubr.msk.bf16.mxu1 %vm4761_vm6, %v4760_v6 }
 0x624   : > { %v2821_v7 = vmax.f32 %v4089_v42, %v4464_v53  ;;  %v2820_v11 = vmax.f32 %v4088_v39, %v4463_v51  ;;  %4102 = vmatprep.subr.bf16.mxu1 %v4760_v6 }
 0x625   : > { %v2819_v14 = vmax.f32 %v2770_v44, %v4459_v55  ;;  %v2818_v16 = vmax.f32 %v2767_v15, %v4458_v57 }
 0x626   : > { %v2825_v17 = vmax.f32 %v2820_v11, %v2821_v7 }
 0x627   : > { %v2824_v18 = vmax.f32 %v2818_v16, %v2819_v14  ;;  %4103 = vmatpush3.bf16.msra.mxu1 %v4512_v5 }
 0x628   : > { %4104 = vmatprep.subr.bf16.mxu1 %v4760_v6  ;;  %v3031_v24 = vpack.c.bf16 %v2825_v17, %v2825_v17 }
 0x629   : > { %v2962_v22 = vpack.c.bf16 %v2824_v18, %v2824_v18 }
 0x62b   : > { %4105 = vmatpush3.bf16.msra.mxu1 %v2920_v62 }
 0x62c   : > { %4110 = vmatprep.subr.bf16.mxu1 %v4760_v6 }
 0x62e   : > { %4107 = vmatmul.mubr.msk.bf16.vlgmr.msra.gmra.mrb[44].mxu1 %vm2854_vm7, %v2826_v60 }
 0x62f   : > { %4111 = vmatpush3.bf16.msra.mxu1 %v4514_v59  ;;  %4116 = vmatprep.mubr.msk.bf16.mxu1 %vm4761_vm6, %v4760_v6 }
 0x630   : > { %4112 = vmatprep.subr.bf16.mxu1 %v4760_v6 }
 0x633   : > { %4113 = vmatpush3.bf16.msra.mxu1 %v4515_v0 }
 0x634   : > { %4114 = vmatprep.subr.bf16.mxu1 %v4760_v6 }
 0x637   : > { %4115 = vmatpush3.bf16.msra.mxu1 %v2988_v19 }
 0x638   : > { %4120 = vmatprep.subr.bf16.mxu1 %v4760_v6 }
 0x63a   : > { %4117 = vmatmul.mubr.msk.bf16.vlgmr.msra.gmra.mrb[48].mxu1 %vm2854_vm7, %v2962_v22 }
 0x63b   : > { %4121 = vmatpush3.bf16.msra.mxu1 %v4517_v21  ;;  %4126 = vmatprep.mubr.msk.bf16.mxu1 %vm4761_vm6, %v4760_v6 }
 0x63c   : > { %4122 = vmatprep.subr.bf16.mxu1 %v4760_v6 }
 0x63f   : > { %4123 = vmatpush3.bf16.msra.mxu1 %v4518_v41 }
 0x640   : > { %4124 = vmatprep.subr.bf16.mxu1 %v4760_v6 }
 0x643   : > { %4125 = vmatpush3.bf16.msra.mxu1 %v3057_v23 }
 0x644   : > { %4130 = vmatprep.subr.bf16.mxu1 %v4760_v6 }
 0x646   : > { %4127 = vmatmul.mubr.msk.bf16.vlgmr.msra.gmra.mrb[52].mxu1 %vm2854_vm7, %v3031_v24 }
 0x647   : > { %4144 = vmatprep.mubr.msk.bf16.mxu1 %vm4761_vm6, %v4760_v6  ;;  %4131 = vmatpush3.bf16.msra.mxu1 %v4520_v25 }
 0x648   : > { %4132 = vmatprep.subr.bf16.mxu1 %v4760_v6 }
 0x64b   : > { %4133 = vmatpush3.bf16.msra.mxu1 %v4521_v26 }
 0x64c   : > { %4134 = vmatprep.subr.bf16.mxu1 %v4760_v6 }
 0x64f   : > { %4135 = vmatpush3.bf16.msra.mxu1 %v4522_v27 }
 0x650   : > { %4136 = vmatprep.subr.bf16.mxu1 %v4760_v6 }
 0x653   : > { %4137 = vmatpush3.bf16.msra.mxu1 %v4523_v28 }
 0x654   : > { %4138 = vmatprep.subr.bf16.mxu1 %v4760_v6 }
 0x657   : > { %4139 = vmatpush3.bf16.msra.mxu1 %v4524_v29 }
 0x658   : > { %4140 = vmatprep.subr.bf16.mxu1 %v4760_v6 }
 0x65b   : > { %4141 = vmatpush3.bf16.msra.mxu1 %v4525_v30 }
 0x65c   : > { %4142 = vmatprep.subr.bf16.mxu1 %v4760_v6 }
 0x65f   : > { %4143 = vmatpush3.bf16.msra.mxu1 %v3175_v20 }
 0x6f5   : > { %v2895_v32 = vpop.f32.mrb[40].mxu1 }
 0x6f6   : > { %v4098_v3 = vpop.f32.mrb[41].mxu1 }
 0x6f7   : > { %v2898_v34 = vpop.f32.mrb[42].mxu1 }
 0x6f8   : > { %v4099_v35 = vpop.f32.mrb[43].mxu1 }
 0x701   : > { %v2956_v36 = vpop.f32.mrb[44].mxu1 }
 0x702   : > { %v2957_v37 = vadd.f32 %v2956_v36, %v2895_v32  ;;  %v4108_v38 = vpop.f32.mrb[45].mxu1 }
 0x703   : > { %v2959_v4 = vpop.f32.mrb[46].mxu1 }
 0x704   : > { %v4109_v2 = vpop.f32.mrb[47].mxu1 }
 0x70d   : > { %v3024_v39 = vpop.f32.mrb[48].mxu1 }
 0x70e   : > { %v3030_v15 = vadd.f32 %v3024_v39, %v2957_v37  ;;  %v4118_v42 = vpop.f32.mrb[49].mxu1 }
 0x70f   : > { %v3027_v6 = vpop.f32.mrb[50].mxu1 }
 0x710   : > { %v4119_v43 = vpop.f32.mrb[51].mxu1 }
 0x719   : > { %v3093_v44 = vpop.f32.mrb[52].mxu1 }
 0x71a   : > { %v3099_v10 = vadd.f32 %v3093_v44, %v3030_v15  ;;  %v4128_v8 = vpop.f32.mrb[53].mxu1 }
 0x71b   : > { %v3096_v9 = vpop.f32.mrb[54].mxu1 }
 0x71c   : > { %v3107_v12 = vadd.f32 %v3635_v45, %v3099_v10  ;;  %v4129_v46 = vpop.f32.mrb[55].mxu1 }
 0x71e   : > { %v3108_v47 = vmax.f32 %v3107_v12, 0.0 }
 0x720   : > { %v3109_v33 = vpack.c.bf16 %v3108_v47, %v3108_v47 }
 0x722   : > { %4145 = vmatmul.mubr.msk.bf16.vlgmr.msra.gmra.mrb[56].mxu1 %vm3169_vm9, %v3109_v33 }
 0x7f5   : > { %v3211_v50 = vpop.f32.mrb[56].mxu1 }
 0x7f6   : > { %v3212_v52 = vadd.f32 %v3636_v49, %v3211_v50  ;;  %v4146_v56 = vpop.f32.mrb[57].mxu1 }
 0x7f7   : > { %v3214_v58 = vpop.f32.mrb[58].mxu1 }
 0x7f8   : > { %v4147_v48 = vpop.f32.mrb[59].mxu1  ;;  %v3218_v63 = vsel %vm3217_vm10, %v3212_v52, -inf }
 0x7f9   : > { %3219 = vmax.xlane.f32.xlu0 %v3218_v63 }
 0x886   : > { %v3220_v1 = vpop.xlane.xlu0 %3219 }
 0x887   : > { %v3221_v53 = vsub.f32 %v3212_v52, %v3220_v1 }
 0x889   : > { %v3222_v51 = vmul.f32 1.442695, %v3221_v53 }
 0x88b   : > { %4527 = vpow2.f32 %v3222_v51 }
 0x895   : > { %v4528_v54 = vpop.eup %4527 }
 0x896   : > { %v3224_v55 = vsel %vm3217_vm10, %v4528_v54, 0.0 }
 0x897   : > { %3225 = vadd.xlane.f32.xlu1 %v3224_v55 }
 0x924   : > { %v3226_v57 = vpop.xlane.xlu1 %3225 }
 0x925   : > { %4529 = vlog2.f32 %v3226_v57 }
 0x92f   : > { %v4530_v5 = vpop.eup %4529 }
 0x930   : > { %v3228_v7 = vmul.f32 0.6931472, %v4530_v5 }
 0x932   : > { %v3229_v11 = vsub.f32 %v3221_v53, %v3228_v7 }
 0x934   : > { %3230 = vst.msk [vmem:[%s461_s15] sm:$0xff] %vm3217_vm10, %v3229_v11 }
 0x935   : > { %4686 = shalt.err (!%p4683_p13)
}
 0x936   : > { %s4687_s11 = scalar_lea.hbm %s5570_s25, 128  ;;  %s4691_s8 = scalar_lea.hbm %s5654_s23, 256 }
 0x937   : > { %p4688_p9 = scmp.ne.s32.totalorder %s5570_s25, %s4687_s11  ;;  %p4692_p4 = scmp.lt.u32.totalorder %s5570_s25, %s5654_s23 }
 0x938   : > { %p4693_p8 = scmp.lt.u32.totalorder %s4691_s8, %s4687_s11  ;;  %p4695_p3 = scmp.lt.u32.totalorder %s4687_s11, %s5570_s25 }
 0x939   : > { %p4689_p0 = pnand %p4688_p9, %p4995_p10 }
 0x93a   : > { %p4694_p6 = por %p4693_p8, %p4692_p4 }
 0x93b   : > { %p4690_p11 = pneg %p4689_p0 }
 0x93c   : > { %p4696_p5 = por %p4695_p3, %p4694_p6 }
 0x93e   : > { %p4697_p7 = pnand %p4696_p5, %p4690_p11 }
 0x940   : > { %4700 = shalt.err (!%p4697_p7)
}
 0x941   : > { %4307 = dma.vmem_to_hbm [thread:$0]  (%p4995_p10), %s5572_s12, 128, %s5570_s25, %s3232_s16  }
 0x942 PF: > { %s5655_s26 = sld [smem:[#allocation16_spill]]  ;;  %s5656_s29 = sld [smem:[#allocation17_spill]] }
 0x943   : > { %p5658_p1 = scmp.ge.s32.totalorder %s4747_s20, 2 }
 0x948   : > { %s3257_s14 = sand.u32 1, %s5655_s26   ;;  %p5657_p12 = scmp.ne.s32.totalorder %s5656_s29, 0 }
 0x949   : > { %s3258_s21 = scalar_lea.sflag [#allocation4], %s3257_s14 }
 0x94a   : > { %p4327_p2 = pnand %p5658_p1, %p5657_p12 }
 0x94c   : > { %4730 = dma.done.wait (!%p4327_p2), %s3258_s21, 128  }
 0x94d   : > { %4732 = vsyncadd (!%p4327_p2), %s3258_s21, 4294967168  ;;  %p26_p13 = scmp.ge.s32.totalorder %s4985_s24, 4   ;;  %s5659_s17 = smov %s4739_s18 }
 0x94e   : > { %s5660_s18 = smov %s4743_s19  ;;  %s5661_s19 = smov %s5001_s22 }
 0x94f   : > { %s5662_s20 = smov %s4985_s24  ;;  %28 = sbr.rel (!%p26_p13) target bundleno = 11 (0xb), region = 140 }
 0x956   :  { %3263 = vsyncpa [#allocation3], 1 }
 0x957   :  { %3265 = vsyncpa [#allocation3 + $0x1], 1 }
 0x958   :  { %3266 = vsyncpa [#allocation6], 1 }
 0x959   :  { %3267 = vsyncpa [#allocation9], 1 }
 0x95a   :  { %3268 = vsyncpa [#allocation4], 1 }
 0x95b   :  { %3270 = vsyncpa [#allocation4 + $0x1], 1 }

</bundles_post_ra>
